<compile_context>
chip_gen: v6e
topology: v6e:2x2x1
jax: 0.10.0
libtpu: 0.0.40
codegen_flags: <defaults>
</compile_context>

<pallas_src>
import jax
import jax.numpy as jnp
from jax import lax
from jax.experimental import pallas as pl
from jax.experimental.pallas import tpu as pltpu


def _make_kernel(C, H, W, O):
    HW = H * W
    f32 = jnp.float32

    def kernel(x_ref, w_ref, b_ref, out_ref):
        # x_ref  : (1, C, H, W)  unpadded image (NCHW per batch element)
        # w_ref  : (O, 9*C)      conv weight * (1/16), columns ordered (dh, dw, cin)
        # b_ref  : (O, 1)        conv bias
        # out_ref: (1, O, H*W)   lane-dense NCHW output (H*W flattened on lanes)
        x = x_ref[0].astype(f32)                                        # (C, H, W)

        # ---- separable 3x3 blur (un-normalized; /16 folded into the weights) ----
        # Horizontal [1,2,1] pass with zero padding in W (valid output columns only).
        zc = jnp.zeros((C, H, 1), f32)
        xw = jnp.concatenate([zc, x, zc], axis=2)                       # (C, H, W+2)
        hz = xw[:, :, 0:W] + 2.0 * xw[:, :, 1:W + 1] + xw[:, :, 2:W + 2]  # (C, H, W)
        # Vertical [1,2,1] pass with zero padding in H.
        zr = jnp.zeros((C, 1, W), f32)
        hv = jnp.concatenate([zr, hz, zr], axis=1)                      # (C, H+2, W)
        bl = hv[:, 0:H, :] + 2.0 * hv[:, 1:H + 1, :] + hv[:, 2:H + 2, :]  # (C, H, W)

        # The trailing conv zero-pads the *blurred* tensor, so the ring around the blurred
        # image must be exactly zero: embed the valid blur into a zero (C, H+2, W+2) frame
        # (no boundary mask needed).
        zc2 = jnp.zeros((C, H, 1), f32)
        zr2 = jnp.zeros((C, 1, W + 2), f32)
        bp = jnp.concatenate([zc2, bl, zc2], axis=2)                    # (C, H,   W+2)
        bp = jnp.concatenate([zr2, bp, zr2], axis=1)                    # (C, H+2, W+2)

        # ---- 3x3 conv as ONE transposed im2col matmul: (O, 9C) @ (9C, H*W) ----
        # patches^T rows ordered (dh, dw, cin) to match w_ref columns.
        slabs = [bp[:, dh:dh + H, dw:dw + W].reshape(C, HW)
                 for dh in range(3) for dw in range(3)]
        patT = jnp.concatenate(slabs, axis=0)                           # (9C, H*W)

        acc = jnp.dot(w_ref[...].astype(f32), patT,
                      preferred_element_type=jnp.float32)               # (O, H*W)
        acc = acc + b_ref[...].astype(f32)                              # (O, 1) broadcast
        out_ref[...] = acc.reshape(1, O, HW).astype(out_ref.dtype)

    return kernel


def blurpool_conv2d(x_nchw, w_oihw, bias):
    """Forward of BlurPoolConv2d.  x: (N,C,H,W), w: (O,C,3,3), bias: (O,).  Returns (N,O,H,W)."""
    N, C, H, W = x_nchw.shape
    O = w_oihw.shape[0]

    # Weight -> (O, 9*C) with columns ordered (dh, dw, cin); fold the blur's 1/16 here
    # (exact: scaling by a power of two).  Bias -> (O, 1) for row-wise broadcast.
    w9t = (jnp.transpose(w_oihw, (0, 2, 3, 1)).reshape(O, 9 * C)
           * (1.0 / 16.0)).astype(jnp.float32)
    b2 = bias.reshape(O, 1).astype(jnp.float32)

    # VMEM limit derived per generation (v7x: 64 MiB total) with a conservative fallback.
    try:
        vmem_cap = int(pltpu.get_tpu_info().vmem_capacity_bytes)
    except Exception:
        vmem_cap = 64 * 1024 * 1024
    vmem_limit = min(vmem_cap * 3 // 4, 100 * 1024 * 1024)

    out_flat = pl.pallas_call(
        _make_kernel(C, H, W, O),
        out_shape=jax.ShapeDtypeStruct((N, O, H * W), x_nchw.dtype),
        grid=(N,),
        in_specs=[
            # Raw unpadded NCHW image per batch element (no HBM pad, no transpose).
            pl.BlockSpec((1, C, H, W), lambda n: (n, 0, 0, 0)),
            pl.BlockSpec((O, 9 * C), lambda n: (0, 0)),
            pl.BlockSpec((O, 1), lambda n: (0, 0)),
        ],
        # Lane-dense output block: minor dim H*W (256 at the demo shape), maps 1:1 to NCHW.
        out_specs=pl.BlockSpec((1, O, H * W), lambda n: (n, 0, 0)),
        compiler_params=pltpu.CompilerParams(
            dimension_semantics=("parallel",),
            vmem_limit_bytes=vmem_limit,
        ),
    )(x_nchw, w9t, b2)

    return out_flat.reshape(N, O, H, W)


def reference(x, w, bias):
    """Pure-JAX reference matching the PyTorch module semantics (NCHW)."""
    C = x.shape[1]
    filt = jnp.array([[1., 2., 1.], [2., 4., 2.], [1., 2., 1.]], jnp.float32) / 16.0
    filt = jnp.tile(filt[None, None], (C, 1, 1, 1))  # (C, 1, 3, 3) depthwise
    blurred = lax.conv_general_dilated(
        x, filt, window_strides=(1, 1), padding=((1, 1), (1, 1)),
        feature_group_count=C, dimension_numbers=("NCHW", "OIHW", "NCHW"))
    out = lax.conv_general_dilated(
        blurred, w, window_strides=(1, 1), padding=((1, 1), (1, 1)),
        dimension_numbers=("NCHW", "OIHW", "NCHW"))
    return out + bias[None, :, None, None]


if __name__ == "__main__":
    key = jax.random.PRNGKey(0)
    kx, kw, kb = jax.random.split(key, 3)

    N, C, H, W, O = 2, 4, 16, 16, 8
    x = jax.random.normal(kx, (N, C, H, W), jnp.float32)
    conv_w = jax.random.normal(kw, (O, C, 3, 3), jnp.float32) * 0.1
    conv_b = jax.random.normal(kb, (O,), jnp.float32) * 0.1

    out = jax.block_until_ready(blurpool_conv2d(x, conv_w, conv_b))
    ref = jax.block_until_ready(reference(x, conv_w, conv_b))

    assert out.shape == (N, O, H, W), out.shape
    assert jnp.allclose(out, ref, rtol=1e-4, atol=1e-4), float(jnp.max(jnp.abs(out - ref)))
    print("KERNEL_OK")
</pallas_src>

<mosaic_0001>
module attributes {stable_mosaic.version = 11 : i64} {
  func.func @kernel(%arg0: i32, %arg1: memref<1x4x16x16xf32, #tpu.memory_space<vmem>>, %arg2: memref<8x36xf32, #tpu.memory_space<vmem>>, %arg3: memref<8x1xf32, #tpu.memory_space<vmem>>, %arg4: memref<1x8x256xf32, #tpu.memory_space<vmem>>) attributes {dimension_semantics = [#tpu.dimension_semantics<parallel>], iteration_bounds = array<i64: 2>, scalar_prefetch = 0 : i64, scratch_operands = 0 : i64, tpu.core_type = #tpu.core_type<tc>, window_params = [{transform_indices = @transform_0, window_bounds = array<i64: 1, 4, 16, 16>}, {pipeline_mode = #tpu.pipeline_mode<synchronous>, transform_indices = @transform_1, window_bounds = array<i64: 8, 36>}, {pipeline_mode = #tpu.pipeline_mode<synchronous>, transform_indices = @transform_2, window_bounds = array<i64: 8, 1>}, {transform_indices = @transform_3, window_bounds = array<i64: 1, 8, 256>}]} {
    %c0 = arith.constant 0 : index
    %c0_0 = arith.constant 0 : index
    %c0_1 = arith.constant 0 : index
    %c0_2 = arith.constant 0 : index
    %0 = vector.load %arg1[%c0, %c0_0, %c0_1, %c0_2] : memref<1x4x16x16xf32, #tpu.memory_space<vmem>>, vector<1x4x16x16xf32>
    %1 = vector.shape_cast %0 : vector<1x4x16x16xf32> to vector<4x16x16xf32>
    %cst = arith.constant 0.000000e+00 : f32
    %2 = vector.broadcast %cst : f32 to vector<4x16x1xf32>
    %3 = tpu.concatenate %2, %1, %2 in 2 : vector<4x16x1xf32>, vector<4x16x16xf32>, vector<4x16x1xf32> -> vector<4x16x18xf32>
    %4 = vector.extract_strided_slice %3 {offsets = [0, 0, 0], sizes = [4, 16, 16], strides = [1, 1, 1]} : vector<4x16x18xf32> to vector<4x16x16xf32>
    %5 = vector.extract_strided_slice %3 {offsets = [0, 0, 1], sizes = [4, 16, 16], strides = [1, 1, 1]} : vector<4x16x18xf32> to vector<4x16x16xf32>
    %cst_3 = arith.constant 2.000000e+00 : f32
    %6 = vector.broadcast %cst_3 : f32 to vector<4x16x16xf32>
    %7 = arith.mulf %6, %5 : vector<4x16x16xf32>
    %8 = arith.addf %4, %7 : vector<4x16x16xf32>
    %9 = vector.extract_strided_slice %3 {offsets = [0, 0, 2], sizes = [4, 16, 16], strides = [1, 1, 1]} : vector<4x16x18xf32> to vector<4x16x16xf32>
    %10 = arith.addf %8, %9 : vector<4x16x16xf32>
    %cst_4 = arith.constant 0.000000e+00 : f32
    %11 = vector.broadcast %cst_4 : f32 to vector<4x1x16xf32>
    %12 = tpu.concatenate %11, %10, %11 in 1 : vector<4x1x16xf32>, vector<4x16x16xf32>, vector<4x1x16xf32> -> vector<4x18x16xf32>
    %13 = vector.extract_strided_slice %12 {offsets = [0, 0, 0], sizes = [4, 16, 16], strides = [1, 1, 1]} : vector<4x18x16xf32> to vector<4x16x16xf32>
    %14 = vector.extract_strided_slice %12 {offsets = [0, 1, 0], sizes = [4, 16, 16], strides = [1, 1, 1]} : vector<4x18x16xf32> to vector<4x16x16xf32>
    %cst_5 = arith.constant 2.000000e+00 : f32
    %15 = vector.broadcast %cst_5 : f32 to vector<4x16x16xf32>
    %16 = arith.mulf %15, %14 : vector<4x16x16xf32>
    %17 = arith.addf %13, %16 : vector<4x16x16xf32>
    %18 = vector.extract_strided_slice %12 {offsets = [0, 2, 0], sizes = [4, 16, 16], strides = [1, 1, 1]} : vector<4x18x16xf32> to vector<4x16x16xf32>
    %19 = arith.addf %17, %18 : vector<4x16x16xf32>
    %cst_6 = arith.constant 0.000000e+00 : f32
    %20 = vector.broadcast %cst_6 : f32 to vector<4x16x1xf32>
    %cst_7 = arith.constant 0.000000e+00 : f32
    %21 = vector.broadcast %cst_7 : f32 to vector<4x1x18xf32>
    %22 = tpu.concatenate %20, %19, %20 in 2 : vector<4x16x1xf32>, vector<4x16x16xf32>, vector<4x16x1xf32> -> vector<4x16x18xf32>
    %23 = tpu.concatenate %21, %22, %21 in 1 : vector<4x1x18xf32>, vector<4x16x18xf32>, vector<4x1x18xf32> -> vector<4x18x18xf32>
    %24 = vector.extract_strided_slice %23 {offsets = [0, 0, 0], sizes = [4, 16, 16], strides = [1, 1, 1]} : vector<4x18x18xf32> to vector<4x16x16xf32>
    %25 = vector.shape_cast %24 : vector<4x16x16xf32> to vector<4x256xf32>
    %26 = vector.extract_strided_slice %23 {offsets = [0, 0, 1], sizes = [4, 16, 16], strides = [1, 1, 1]} : vector<4x18x18xf32> to vector<4x16x16xf32>
    %27 = vector.shape_cast %26 : vector<4x16x16xf32> to vector<4x256xf32>
    %28 = vector.extract_strided_slice %23 {offsets = [0, 0, 2], sizes = [4, 16, 16], strides = [1, 1, 1]} : vector<4x18x18xf32> to vector<4x16x16xf32>
    %29 = vector.shape_cast %28 : vector<4x16x16xf32> to vector<4x256xf32>
    %30 = vector.extract_strided_slice %23 {offsets = [0, 1, 0], sizes = [4, 16, 16], strides = [1, 1, 1]} : vector<4x18x18xf32> to vector<4x16x16xf32>
    %31 = vector.shape_cast %30 : vector<4x16x16xf32> to vector<4x256xf32>
    %32 = vector.extract_strided_slice %23 {offsets = [0, 1, 1], sizes = [4, 16, 16], strides = [1, 1, 1]} : vector<4x18x18xf32> to vector<4x16x16xf32>
    %33 = vector.shape_cast %32 : vector<4x16x16xf32> to vector<4x256xf32>
    %34 = vector.extract_strided_slice %23 {offsets = [0, 1, 2], sizes = [4, 16, 16], strides = [1, 1, 1]} : vector<4x18x18xf32> to vector<4x16x16xf32>
    %35 = vector.shape_cast %34 : vector<4x16x16xf32> to vector<4x256xf32>
    %36 = vector.extract_strided_slice %23 {offsets = [0, 2, 0], sizes = [4, 16, 16], strides = [1, 1, 1]} : vector<4x18x18xf32> to vector<4x16x16xf32>
    %37 = vector.shape_cast %36 : vector<4x16x16xf32> to vector<4x256xf32>
    %38 = vector.extract_strided_slice %23 {offsets = [0, 2, 1], sizes = [4, 16, 16], strides = [1, 1, 1]} : vector<4x18x18xf32> to vector<4x16x16xf32>
    %39 = vector.shape_cast %38 : vector<4x16x16xf32> to vector<4x256xf32>
    %40 = vector.extract_strided_slice %23 {offsets = [0, 2, 2], sizes = [4, 16, 16], strides = [1, 1, 1]} : vector<4x18x18xf32> to vector<4x16x16xf32>
    %41 = vector.shape_cast %40 : vector<4x16x16xf32> to vector<4x256xf32>
    %42 = tpu.concatenate %25, %27, %29, %31, %33, %35, %37, %39, %41 in 0 : vector<4x256xf32>, vector<4x256xf32>, vector<4x256xf32>, vector<4x256xf32>, vector<4x256xf32>, vector<4x256xf32>, vector<4x256xf32>, vector<4x256xf32>, vector<4x256xf32> -> vector<36x256xf32>
    %c0_8 = arith.constant 0 : index
    %c0_9 = arith.constant 0 : index
    %43 = vector.load %arg2[%c0_8, %c0_9] : memref<8x36xf32, #tpu.memory_space<vmem>>, vector<8x36xf32>
    %cst_10 = arith.constant dense<0.000000e+00> : vector<8x256xf32>
    %44 = tpu.matmul %43, %42, %cst_10 {dimension_numbers = #tpu.dot_dimension_numbers<[1], [0], [0], [1], [0, 0, 1, 1], [], []>} : vector<8x36xf32>, vector<36x256xf32>, vector<8x256xf32> -> vector<8x256xf32>
    %c0_11 = arith.constant 0 : index
    %c0_12 = arith.constant 0 : index
    %45 = vector.load %arg3[%c0_11, %c0_12] : memref<8x1xf32, #tpu.memory_space<vmem>>, vector<8x1xf32>
    %46 = vector.broadcast %45 : vector<8x1xf32> to vector<8x256xf32>
    %47 = arith.addf %44, %46 : vector<8x256xf32>
    %48 = vector.shape_cast %47 : vector<8x256xf32> to vector<1x8x256xf32>
    %c0_13 = arith.constant 0 : index
    %c0_14 = arith.constant 0 : index
    %c0_15 = arith.constant 0 : index
    %49 = vector.load %arg4[%c0_13, %c0_14, %c0_15] : memref<1x8x256xf32, #tpu.memory_space<vmem>>, vector<1x8x256xf32>
    tpu.vector_store %arg4[%c0_13, %c0_14, %c0_15], %48 {strides = array<i32>} : memref<1x8x256xf32, #tpu.memory_space<vmem>>, vector<1x8x256xf32>,
    return
  }
  func.func @transform_0(%arg0: i32) -> (i32, i32, i32, i32) {
    %c0_i32 = arith.constant 0 : i32
    %c0_i32_0 = arith.constant 0 : i32
    %c0_i32_1 = arith.constant 0 : i32
    %c0_i32_2 = arith.constant 0 : i32
    return %arg0, %c0_i32, %c0_i32_0, %c0_i32_1 : i32, i32, i32, i32
  }
  func.func @transform_1(%arg0: i32) -> (i32, i32) {
    %c0_i32 = arith.constant 0 : i32
    %c0_i32_0 = arith.constant 0 : i32
    %c0_i32_1 = arith.constant 0 : i32
    return %c0_i32, %c0_i32_0 : i32, i32
  }
  func.func @transform_2(%arg0: i32) -> (i32, i32) {
    %c0_i32 = arith.constant 0 : i32
    %c0_i32_0 = arith.constant 0 : i32
    %c0_i32_1 = arith.constant 0 : i32
    return %c0_i32, %c0_i32_0 : i32, i32
  }
  func.func @transform_3(%arg0: i32) -> (i32, i32, i32) {
    %c0_i32 = arith.constant 0 : i32
    %c0_i32_0 = arith.constant 0 : i32
    %c0_i32_1 = arith.constant 0 : i32
    return %arg0, %c0_i32, %c0_i32_0 : i32, i32, i32
  }
}

</mosaic_0001>

<bundles_post_ra>
// kernel: tpu_custom_call.1
= control target key start
LH: loop header
LB: loop body
LE: loop exit
PB: predicated region body
PF: predicated region fallthrough
CT: control target
= control target key end

     0   :  { %8 = vsyncpa [#allocation3], 0  ;;  %s4837_s0 = inlined_call_operand.hbm [shape: f32[2,4,16,16], index: 0, kind: input, shape index: {}]   ;;  %s4838_s1 = inlined_call_operand.vmem [shape: f32[8,36], index: 1, kind: input, shape index: {}]   ;;  %s4839_s2 = inlined_call_operand.vmem [shape: f32[8,1], index: 2, kind: input, shape index: {}]   ;;  %s4840_s3 = inlined_call_operand.hbm [shape: f32[2,8,256], index: 3, kind: output, shape index: {}]  }
   0x1   :  { %10 = vsyncpa [#allocation3 + $0x1], 0 }
   0x2   :  { %11 = vsyncpa [#allocation4], 0 }
   0x3   :  { %13 = vsyncpa [#allocation4 + $0x1], 0  ;;  %s3061_s12 = smov 0   ;;  %s3063_s13 = smov 0  }
   0x4   :  { %s3065_s14 = smov 0   ;;  %s3067_s15 = smov 0  }
   0x5 LB: > { %s3082_s16 = sadd.s32 4294967295, %s3021_s15   ;;  %s2847_s17 = sadd.s32 4294967294, %s3021_s15   ;;  %s3021_s15 = sphi %s3067_s15, %s4941_s15   ;;  %s3017_s14 = sphi %s3065_s14, %s4940_s14   ;;  %s3013_s13 = sphi %s3063_s13, %s4939_s13   ;;  %s3009_s12 = sphi %s3061_s12, %s4938_s12  }
   0x6   : > { %s3086_s18 = sadd.s32 1, %s3021_s15   ;;  %s26_s19 = sadd.s32 1, %s3017_s14 }
   0x7   : > { %s23_s20 = ssub.s32 %s3021_s15, %s3086_s18  ;;  %p33_p0 = scmp.ne.s32.totalorder %s3017_s14, %s3013_s13 }
   0x8   : > { %p24_p1 = scmp.eq.s32.totalorder %s23_s20, 0  ;;  %p34_p2 = scmp.eq.s32.totalorder %s3021_s15, 0 }
   0x9   : > { %p39_p3 = scmp.ne.s32.totalorder %s3013_s13, %s3009_s12  ;;  %p40_p4 = scmp.eq.s32.totalorder %s3082_s16, 0 }
   0xa   : > { %s3098_s21 = scalar_select %p24_p1, %s3017_s14, %s26_s19  }
   0xb   : > { %p3100_p5 = por %p34_p2, %p33_p0  ;;  %p3104_p6 = por %p40_p4, %p39_p3 }
   0xc   : > { %p105_p7 = scmp.eq.s32.totalorder %s3082_s16, 1  ;;  %p111_p8 = scmp.eq.s32.totalorder %s2847_s17, 1 }
   0xd   : > { %s4866_s23 = scalar_select %p3104_p6, 1, 0 }
   0xe   : > { %p2878_p10 = scmp.lt.s32.totalorder %s3021_s15, 2  ;;  %p3111_p11 = por %p105_p7, %p33_p0 }
   0xf   : > { %p3115_p12 = por %p111_p8, %p39_p3  ;;  %s137_s26 = sand.u32 1, %s3017_s14  }
  0x10   : > { %s4867_s24 = scalar_select %p3111_p11, 1, 0 }
  0x11   : > { %s4868_s25 = scalar_select %p3115_p12, 1, 0 }
  0x12   : > { %s2864_s27 = sshll.u32 %s3021_s15, 10  ;;  %s2850_s28 = sshll.u32 %s137_s26, 6 }
  0x13   : > { %s3124_s4 = scalar_lea.hbm %s4837_s0, %s2864_s27  ;;  %s141_s5 = scalar_lea.vmem [#allocation2], %s2850_s28 }
  0x14   : > { %s148_s6 = sshll.u32 %s141_s5, 4  ;;  %p3128_p13 = pnand %p2878_p10, %p3100_p5  ;;  %s3132_s6 = int_to_ptr.vmem [resolvable:$true] %s148_s6 }
  0x15   : > { %s3134_s8 = scalar_lea.sflag [#allocation3], %s137_s26  ;;  %s2929_s9 = scalar_lea.hbm %s3124_s4, 1024 }
  0x16   : > { %p2930_p0 = scmp.ne.s32.totalorder %s3124_s4, %s2929_s9  ;;  %p2931_p1 = pneg %p3128_p13 }
  0x17   : > { %s2934_s17 = scalar_lea.hbm %s4837_s0, 2048  ;;  %p2935_p4 = scmp.lt.s32.totalorder %s3124_s4, %s4837_s0 }
  0x18   : > { %p2932_p2 = pnand %p2931_p1, %p2930_p0  ;;  %p2936_p5 = scmp.lt.s32.totalorder %s2934_s17, %s2929_s9 }
  0x1a   : > { %p2933_p3 = pneg %p2932_p2  ;;  %p2937_p7 = por %p2936_p5, %p2935_p4 }
  0x1c   : > { %p2938_p8 = pnand %p2937_p7, %p2933_p3 }
  0x1e   : > { %2941 = shalt.err (!%p2938_p8)
}
  0x1f   : > { %s2942_s22 = scalar_lea.vmem %s3132_s6, 1024  ;;  %s3023_s26 = smov [#allocation2]  }
  0x20   : > { %p2943_p10 = scmp.ne.s32.totalorder %s3132_s6, %s2942_s22  ;;  %s2947_s27 = sshll.u32 %s3023_s26, 4  ;;  %s2948_s27 = int_to_ptr.vmem [resolvable:$false] %s2947_s27 }
  0x21   : > { %s2949_s28 = scalar_lea.vmem %s2948_s27, 2048  ;;  %p2950_p2 = scmp.lt.s32.totalorder %s3132_s6, %s2948_s27 }
  0x22   : > { %p2945_p9 = pnand %p2943_p10, %p2931_p1  ;;  %p2951_p12 = scmp.lt.s32.totalorder %s2949_s28, %s2942_s22 }
  0x24   : > { %p2946_p0 = pneg %p2945_p9  ;;  %p2952_p11 = por %p2951_p12, %p2950_p2 }
  0x26   : > { %p2953_p6 = pnand %p2952_p11, %p2946_p0 }
  0x28   : > { %2956 = shalt.err (!%p2953_p6)
}
  0x29   : > { %s3024_s29 = smov 128   ;;  %s3025_s30 = smov 8  }
  0x2a   : > { %2873 = dma.hbm_to_vmem [thread:$0]  (!%p3128_p13), %s3124_s4, 1024, %s3132_s6, %s3134_s8, %s3024_s29, %s3024_s29, %s3025_s30  }
  0x2b   : > { %p2853_p9 = scmp.ge.s32.totalorder %s3021_s15, 1  ;;  %p156_p1 = scmp.lt.s32.totalorder %s3021_s15, 3 }
  0x2d   : > { %p157_p3 = pnand %p2853_p9, %p156_p1 }
  0x2f   : > { %160 = sbr.rel (%p157_p3) target bundleno = 1132 (0x46c), region = 32 }
  0x34   : > { %s3158_s5 = sand.u32 1, %s3013_s13   ;;  %p4870_p6 = scmp.ne.s32.totalorder %s4866_s23, 0 }
  0x35   : > { %s2854_s9 = sshll.u32 %s3158_s5, 6  ;;  %s163_s10 = scalar_lea.sflag [#allocation3], %s3158_s5 }
  0x36   : > { %s166_s11 = scalar_lea.vmem [#allocation2], %s2854_s9 }
  0x37   : > { %3000 = dma.done.wait (%p4870_p6), %s163_s10, 1024  }
  0x38   : > { %3002 = vsyncadd (%p4870_p6), %s163_s10, 4294966272  ;;  %v189_v0 = vld [vmem:[%s166_s11] sm:$0xff]  ;;  %v191_v1 = vld [vmem:[%s166_s11 + $0x10] sm:$0xff]  ;;  %s3026_s4 = smov 1   ;;  %vm229_vm0 = vcmask 7168   ;;  %vm238_vm1 = vcmask 138240  }
  0x39   : > { %205 = vrot.lane.b32.xlu0 %v189_v0, %s3026_s4  ;;  %209 = vrot.lane.b32.xlu1 %v191_v1, %s3026_s4  ;;  %v190_v2 = vld [vmem:[%s166_s11 + $0x8] sm:$0xff]  ;;  %v192_v3 = vld [vmem:[%s166_s11 + $0x18] sm:$0xff]  ;;  %s3027_s23 = smov 126   ;;  %s3028_s6 = smov 127   ;;  %vm343_vm2 = vcmask 1040384   ;;  %vm400_vm3 = vcmask 1046528  }
  0x3a   : > { %v193_v4 = vld [vmem:[%s166_s11 + $0x20] sm:$0xff]  ;;  %v194_v5 = vld [vmem:[%s166_s11 + $0x28] sm:$0xff]  ;;  %v195_v6 = vld [vmem:[%s166_s11 + $0x30] sm:$0xff]  ;;  %vm445_vm4 = vcmask 1045504   ;;  %s3032_s7 = smov 32   ;;  %s3033_s8 = smov 64  }
  0x3b   : > { %v196_v7 = vld [vmem:[%s166_s11 + $0x38] sm:$0xff]  ;;  %s3034_s17 = smov 48   ;;  %s3035_s19 = smov 96   ;;  %vm762_vm5 = vcmask 130048   ;;  %vm764_vm6 = vcmask 261120   ;;  %vm766_vm7 = vcmask 392192  }
  0x3c   : > { %s3036_s20 = smov 80   ;;  %s3037_s22 = smov 16   ;;  %vm768_vm8 = vcmask 523264   ;;  %vm770_vm9 = vcmask 654336   ;;  %vm774_vm10 = vcmask 916480   ;;  %vm772_vm11 = vcmask 785408  }
  0x3d   : > { %207 = vrot.lane.b32.xlu0 %v190_v2, %s3026_s4  ;;  %211 = vrot.lane.b32.xlu1 %v192_v3, %s3026_s4  ;;  %s3038_s26 = smov 112   ;;  %vm2663_vm12 = vcmask 1043456   ;;  %vm2679_vm13 = vcmask 293888   ;;  %s2855_s9 = sshll.u32 %s3158_s5, 4 }
  0x3e   : > { %s2865_s10 = sshll.u32 %s3082_s16, 8  ;;  %s188_s11 = scalar_lea.vmem [#allocation5], %s2855_s9 }
  0x3f   : > { %p4935_p12 = scmp.ne.s32.totalorder %s4867_s24, 0 }
  0x41   : > { %213 = vrot.lane.b32.xlu0 %v193_v4, %s3026_s4  ;;  %215 = vrot.lane.b32.xlu1 %v194_v5, %s3026_s4 }
  0x45   : > { %217 = vrot.lane.b32.xlu0 %v195_v6, %s3026_s4  ;;  %219 = vrot.lane.b32.xlu1 %v196_v7, %s3026_s4 }
  0xab   : > { %v206_v8 = vpop.permute.xlu0 %205  ;;  %v210_v9 = vpop.permute.xlu1 %209 }
  0xac   : > { %v230_v10 = vsel %vm229_vm0, 0.0, %v206_v8  ;;  %v232_v11 = vsel %vm229_vm0, 0.0, %v210_v9 }
  0xad   : > { %v239_v12 = vsel %vm238_vm1, %v230_v10, 0.0  ;;  %v241_v14 = vsel %vm238_vm1, %v232_v11, 0.0 }
  0xae   : > { %303 = vrot.lane.b32.xlu0 %v239_v12, %s3027_s23  ;;  %v247_v32 = vmul.f32 2.0, %v239_v12  ;;  %v249_v34 = vmul.f32 2.0, %v241_v14 }
  0xaf   : > { %v208_v13 = vpop.permute.xlu0 %207  ;;  %v212_v15 = vpop.permute.xlu1 %211 }
  0xb0   : > { %v231_v16 = vsel %vm229_vm0, 0.0, %v208_v13  ;;  %v233_v17 = vsel %vm229_vm0, 0.0, %v212_v15 }
  0xb1   : > { %v240_v18 = vsel %vm238_vm1, %v231_v16, 0.0  ;;  %v242_v20 = vsel %vm238_vm1, %v233_v17, 0.0 }
  0xb2   : > { %307 = vrot.lane.b32.xlu0 %v241_v14, %s3027_s23  ;;  %305 = vrot.lane.b32.xlu1 %v240_v18, %s3027_s23  ;;  %v248_v33 = vmul.f32 2.0, %v240_v18  ;;  %v250_v35 = vmul.f32 2.0, %v242_v20 }
  0xb3   : > { %v214_v19 = vpop.permute.xlu0 %213  ;;  %v216_v21 = vpop.permute.xlu1 %215 }
  0xb4   : > { %v234_v22 = vsel %vm229_vm0, 0.0, %v214_v19  ;;  %v235_v23 = vsel %vm229_vm0, 0.0, %v216_v21 }
  0xb5   : > { %v243_v24 = vsel %vm238_vm1, %v234_v22, 0.0  ;;  %v3191_v26 = vsel %vm238_vm1, %v235_v23, 0.0 }
  0xb6   : > { %309 = vrot.lane.b32.xlu1 %v242_v20, %s3027_s23  ;;  %311 = vrot.lane.b32.xlu0 %v243_v24, %s3027_s23  ;;  %v251_v36 = vmul.f32 2.0, %v243_v24  ;;  %v252_v37 = vmul.f32 2.0, %v3191_v26 }
  0xb7   : > { %v218_v25 = vpop.permute.xlu0 %217  ;;  %v220_v27 = vpop.permute.xlu1 %219 }
  0xb8   : > { %v236_v28 = vsel %vm229_vm0, 0.0, %v218_v25  ;;  %v237_v29 = vsel %vm229_vm0, 0.0, %v220_v27 }
  0xb9   : > { %v245_v30 = vsel %vm238_vm1, %v236_v28, 0.0  ;;  %v3200_v31 = vsel %vm238_vm1, %v237_v29, 0.0 }
  0xba   : > { %313 = vrot.lane.b32.xlu1 %v3191_v26, %s3027_s23  ;;  %315 = vrot.lane.b32.xlu0 %v245_v30, %s3027_s23  ;;  %v253_v38 = vmul.f32 2.0, %v245_v30  ;;  %v254_v39 = vmul.f32 2.0, %v3200_v31 }
  0xbe   : > { %317 = vrot.lane.b32.xlu1 %v3200_v31, %s3027_s23  ;;  %263 = vrot.lane.b32.xlu0 %v247_v32, %s3028_s6 }
  0xc2   : > { %265 = vrot.lane.b32.xlu1 %v248_v33, %s3028_s6  ;;  %267 = vrot.lane.b32.xlu0 %v249_v34, %s3028_s6 }
  0xc6   : > { %269 = vrot.lane.b32.xlu1 %v250_v35, %s3028_s6  ;;  %271 = vrot.lane.b32.xlu0 %v251_v36, %s3028_s6 }
  0xca   : > { %273 = vrot.lane.b32.xlu1 %v252_v37, %s3028_s6  ;;  %275 = vrot.lane.b32.xlu0 %v253_v38, %s3028_s6 }
  0xce   : > { %277 = vrot.lane.b32.xlu1 %v254_v39, %s3028_s6 }
 0x120   : > { %v304_v40 = vpop.permute.xlu0 %303 }
 0x124   : > { %v306_v41 = vpop.permute.xlu1 %305  ;;  %v308_v42 = vpop.permute.xlu0 %307 }
 0x128   : > { %v310_v43 = vpop.permute.xlu1 %309  ;;  %v312_v44 = vpop.permute.xlu0 %311 }
 0x12c   : > { %v314_v45 = vpop.permute.xlu1 %313  ;;  %v316_v46 = vpop.permute.xlu0 %315 }
 0x130   : > { %v318_v47 = vpop.permute.xlu1 %317  ;;  %v264_v48 = vpop.permute.xlu0 %263 }
 0x131   : > { %v287_v49 = vadd.f32 %v264_v48, %v239_v12 }
 0x133   : > { %v327_v50 = vadd.f32 %v304_v40, %v287_v49 }
 0x134   : > { %v266_v51 = vpop.permute.xlu1 %265  ;;  %v268_v52 = vpop.permute.xlu0 %267 }
 0x135   : > { %v344_v53 = vrot.slane %v327_v50, 7  ;;  %v288_v54 = vadd.f32 %v266_v51, %v240_v18  ;;  %v289_v55 = vadd.f32 %v268_v52, %v241_v14 }
 0x137   : > { %v3215_v56 = vsel %vm343_vm2, 0.0, %v344_v53  ;;  %v328_v57 = vadd.f32 %v306_v41, %v288_v54  ;;  %v329_v58 = vadd.f32 %v308_v42, %v289_v55 }
 0x138   : > { %v270_v59 = vpop.permute.xlu1 %269  ;;  %v272_v60 = vpop.permute.xlu0 %271  ;;  %v376_v1 = vmul.f32 2.0, %v3215_v56  ;;  %v446_v14 = vrot.slane %v3215_v56, 2 }
 0x139   : > { %v345_v61 = vrot.slane %v328_v57, 7  ;;  %v347_v62 = vrot.slane %v329_v58, 7  ;;  %v290_v63 = vadd.f32 %v270_v59, %v242_v20  ;;  %v291_v0 = vadd.f32 %v272_v60, %v243_v24 }
 0x13a   : > { %v401_v13 = vrot.slane %v376_v1, 1 }
 0x13b   : > { %v372_v2 = vsel %vm343_vm2, %v345_v61, 0.0  ;;  %v3220_v3 = vsel %vm343_vm2, 0.0, %v347_v62  ;;  %v330_v4 = vadd.f32 %v310_v43, %v290_v63  ;;  %v331_v5 = vadd.f32 %v312_v44, %v291_v0 }
 0x13c   : > { %v378_v6 = vmul.f32 2.0, %v372_v2  ;;  %v274_v7 = vpop.permute.xlu1 %273  ;;  %v276_v8 = vpop.permute.xlu0 %275  ;;  %v379_v15 = vmul.f32 2.0, %v3220_v3  ;;  %v346_v16 = vsel %vm343_vm2, %v344_v53, %v345_v61  ;;  %v449_v22 = vrot.slane %v372_v2, 2 }
 0x13d   : > { %v348_v9 = vrot.slane %v330_v4, 7  ;;  %v350_v10 = vrot.slane %v331_v5, 7  ;;  %v292_v11 = vadd.f32 %v274_v7, %v3191_v26  ;;  %v293_v12 = vadd.f32 %v276_v8, %v245_v30 }
 0x13e   : > { %v404_v21 = vrot.slane %v378_v6, 1  ;;  %v451_v23 = vrot.slane %v3220_v3, 2  ;;  %v377_v29 = vmul.f32 2.0, %v346_v16  ;;  %v406_v30 = vrot.slane %v379_v15, 1 }
 0x13f   : > { %v373_v17 = vsel %vm343_vm2, %v348_v9, 0.0  ;;  %v3228_v18 = vsel %vm343_vm2, 0.0, %v350_v10  ;;  %v332_v19 = vadd.f32 %v314_v45, %v292_v11  ;;  %v333_v20 = vadd.f32 %v316_v46, %v293_v12 }
 0x140   : > { %v381_v24 = vmul.f32 2.0, %v373_v17  ;;  %v278_v25 = vpop.permute.xlu1 %277  ;;  %v454_v32 = vrot.slane %v373_v17, 2  ;;  %v382_v33 = vmul.f32 2.0, %v3228_v18  ;;  %v447_v34 = vrot.slane %v346_v16, 2 }
 0x141   : > { %v351_v26 = vrot.slane %v332_v19, 7  ;;  %v353_v27 = vrot.slane %v333_v20, 7  ;;  %v294_v28 = vadd.f32 %v278_v25, %v3200_v31  ;;  %v402_v38 = vrot.slane %v377_v29, 1 }
 0x142   : > { %v409_v39 = vrot.slane %v381_v24, 1  ;;  %v456_v40 = vrot.slane %v3228_v18, 2  ;;  %v349_v42 = vsel %vm343_vm2, %v347_v62, %v348_v9  ;;  %v411_v46 = vrot.slane %v382_v33, 1 }
 0x143   : > { %v374_v35 = vsel %vm343_vm2, %v351_v26, 0.0  ;;  %v3235_v36 = vsel %vm343_vm2, 0.0, %v353_v27  ;;  %v334_v37 = vadd.f32 %v318_v47, %v294_v28  ;;  %v405_v44 = vsel %vm400_vm3, %v402_v38, %v404_v21 }
 0x144   : > { %v384_v41 = vmul.f32 2.0, %v374_v35  ;;  %v385_v31 = vmul.f32 2.0, %v3235_v36  ;;  %v403_v45 = vsel %vm400_vm3, %v401_v13, %v402_v38  ;;  %v459_v48 = vrot.slane %v374_v35, 2 }
 0x145   : > { %v354_v43 = vrot.slane %v334_v37, 7  ;;  %v430_v49 = vadd.f32 %v405_v44, %v346_v16  ;;  %v429_v50 = vadd.f32 %v403_v45, %v3215_v56  ;;  %v450_v51 = vsel %vm445_vm4, %v447_v34, %v449_v22 }
 0x146   : > { %v448_v52 = vsel %vm445_vm4, %v446_v14, %v447_v34  ;;  %v380_v53 = vmul.f32 2.0, %v349_v42  ;;  %v452_v58 = vrot.slane %v349_v42, 2  ;;  %v414_v59 = vrot.slane %v384_v41, 1 }
 0x147   : > { %v375_v47 = vsel %vm343_vm2, %v354_v43, 0.0  ;;  %v475_v55 = vadd.f32 %v450_v51, %v430_v49  ;;  %v474_v57 = vadd.f32 %v448_v52, %v429_v50  ;;  %v416_v60 = vrot.slane %v385_v31, 1 }
 0x148   : > { %v387_v54 = vmul.f32 2.0, %v375_v47  ;;  %v407_v61 = vrot.slane %v380_v53, 1  ;;  %v352_v62 = vsel %vm343_vm2, %v350_v10, %v351_v26  ;;  %v464_v63 = vrot.slane %v375_v47, 2 }
 0x149   : > { %492 = vrot.lane.b32.xlu1 %v475_v55, %s3026_s4  ;;  %490 = vrot.lane.b32.xlu0 %v474_v57, %s3026_s4  ;;  %v383_v56 = vmul.f32 2.0, %v352_v62  ;;  %v457_v0 = vrot.slane %v352_v62, 2  ;;  %v355_v1 = vsel %vm343_vm2, %v353_v27, %v354_v43  ;;  %v455_v8 = vsel %vm445_vm4, %v452_v58, %v454_v32 }
 0x14a   : > { %v419_v2 = vrot.slane %v387_v54, 1  ;;  %v410_v4 = vsel %vm400_vm3, %v407_v61, %v409_v39  ;;  %v408_v5 = vsel %vm400_vm3, %v406_v30, %v407_v61  ;;  %v386_v6 = vmul.f32 2.0, %v355_v1 }
 0x14b   : > { %v432_v7 = vadd.f32 %v410_v4, %v349_v42  ;;  %v431_v9 = vadd.f32 %v408_v5, %v3220_v3  ;;  %v412_v10 = vrot.slane %v383_v56, 1  ;;  %v453_v11 = vsel %vm445_vm4, %v451_v23, %v452_v58 }
 0x14c   : > { %v460_v12 = vsel %vm445_vm4, %v457_v0, %v459_v48  ;;  %v417_v13 = vrot.slane %v386_v6, 1  ;;  %v462_v14 = vrot.slane %v355_v1, 2  ;;  %v458_v23 = vsel %vm445_vm4, %v456_v40, %v457_v0 }
 0x14d   : > { %v477_v15 = vadd.f32 %v455_v8, %v432_v7  ;;  %v476_v16 = vadd.f32 %v453_v11, %v431_v9  ;;  %v415_v17 = vsel %vm400_vm3, %v412_v10, %v414_v59  ;;  %v413_v19 = vsel %vm400_vm3, %v411_v46, %v412_v10 }
 0x14e   : > { %v434_v20 = vadd.f32 %v415_v17, %v352_v62  ;;  %v433_v21 = vadd.f32 %v413_v19, %v3228_v18  ;;  %v420_v22 = vsel %vm400_vm3, %v417_v13, %v419_v2  ;;  %v418_v3 = vsel %vm400_vm3, %v416_v60, %v417_v13 }
 0x14f   : > { %496 = vrot.lane.b32.xlu1 %v477_v15, %s3026_s4  ;;  %494 = vrot.lane.b32.xlu0 %v476_v16, %s3026_s4  ;;  %v436_v24 = vadd.f32 %v420_v22, %v355_v1  ;;  %v435_v25 = vadd.f32 %v418_v3, %v3235_v36  ;;  %v461_v26 = vrot.slane %v3235_v36, 2  ;;  %v465_v29 = vsel %vm445_vm4, %v462_v14, %v464_v63 }
 0x150   : > { %v479_v27 = vadd.f32 %v460_v12, %v434_v20  ;;  %v478_v28 = vadd.f32 %v458_v23, %v433_v21  ;;  %v4844_v33 = vmov 0.0   ;;  %v3030_v61 = vmov 1983009808  }
 0x151   : > { %v463_v18 = vsel %vm445_vm4, %v461_v26, %v462_v14  ;;  %v481_v30 = vadd.f32 %v465_v29, %v436_v24  ;;  %2753 = vmatprep.mubr.f32.mxu0 %v4844_v33  ;;  %v573_v62 = vunpack.c.l.s4 %v3030_v61  ;;  %v575_v63 = vlaneseq }
 0x152   : > { %v480_v32 = vadd.f32 %v463_v18, %v435_v25 }
 0x153   : > { %500 = vrot.lane.b32.xlu1 %v479_v27, %s3026_s4  ;;  %498 = vrot.lane.b32.xlu0 %v478_v28, %s3026_s4 }
 0x157   : > { %504 = vrot.lane.b32.xlu1 %v481_v30, %s3026_s4  ;;  %502 = vrot.lane.b32.xlu0 %v480_v32, %s3026_s4  ;;  %s2777_s4 = sshll.u32 %s188_s11, 4  ;;  %s2778_s4 = int_to_ptr.vmem [resolvable:$true] %s2777_s4 }
 0x1bb   : > { %v493_v34 = vpop.permute.xlu1 %492  ;;  %v491_v35 = vpop.permute.xlu0 %490 }
 0x1bc   : > { %v515_v36 = vsel %vm229_vm0, 0.0, %v493_v34  ;;  %v514_v37 = vsel %vm229_vm0, 0.0, %v491_v35  ;;  %v574_v35 = vunpack.c.0.s8 %v573_v62 }
 0x1bd   : > { %v523_v38 = vsel %vm238_vm1, %v515_v36, 0.0  ;;  %v522_v39 = vsel %vm238_vm1, %v514_v37, 0.0  ;;  %v3362_v36 = vshrl.u32 %v575_v63, 7 }
 0x1be   : > { %v539_v40 = vrot.slane %v523_v38, 7  ;;  %v538_v41 = vrot.slane %v522_v39, 7 }
 0x1c0   : > { %v3278_v42 = vsel %vm343_vm2, %v538_v41, %v539_v40  ;;  %v3287_v52 = vsel %vm343_vm2, %v539_v40, 0.0  ;;  %v3290_v53 = vsel %vm343_vm2, 0.0, %v538_v41 }
 0x1c1   : > { %v497_v31 = vpop.permute.xlu1 %496  ;;  %v495_v43 = vpop.permute.xlu0 %494  ;;  %789 = vrot.lane.b32.xlu1 %v3278_v42, %s3028_s6  ;;  %v1948_v56 = vrot.slane %v3287_v52, 2  ;;  %v1946_v4 = vrot.slane %v3278_v42, 2  ;;  %v1945_v5 = vrot.slane %v3290_v53, 2 }
 0x1c2   : > { %v517_v44 = vsel %vm229_vm0, 0.0, %v497_v31  ;;  %v516_v45 = vsel %vm229_vm0, 0.0, %v495_v43 }
 0x1c3   : > { %v525_v46 = vsel %vm238_vm1, %v517_v44, 0.0  ;;  %v524_v48 = vsel %vm238_vm1, %v516_v45, 0.0  ;;  %v3330_v22 = vsel %vm445_vm4, %v1946_v4, %v1948_v56  ;;  %v3359_v32 = vsel %vm445_vm4, %v1945_v5, %v1946_v4 }
 0x1c4   : > { %v542_v49 = vrot.slane %v525_v46, 7  ;;  %v541_v50 = vrot.slane %v524_v48, 7  ;;  %v3390_v46 = vsub.s32 %v574_v35, %v3362_v36 }
 0x1c5   : > { %v501_v47 = vpop.permute.xlu1 %500  ;;  %v499_v51 = vpop.permute.xlu0 %498 }
 0x1c6   : > { %v3293_v54 = vsel %vm343_vm2, %v541_v50, %v542_v49  ;;  %v519_v55 = vsel %vm229_vm0, 0.0, %v501_v47  ;;  %v518_v58 = vsel %vm229_vm0, 0.0, %v499_v51  ;;  %v3305_v6 = vsel %vm343_vm2, %v542_v49, 0.0 }
 0x1c7   : > { %v527_v57 = vsel %vm238_vm1, %v519_v55, 0.0  ;;  %793 = vrot.lane.b32.xlu0 %v3293_v54, %s3028_s6  ;;  %v526_v60 = vsel %vm238_vm1, %v518_v58, 0.0  ;;  %v3313_v10 = vsel %vm343_vm2, 0.0, %v541_v50  ;;  %v1953_v19 = vrot.slane %v3305_v6, 2 }
 0x1c8   : > { %v545_v59 = vrot.slane %v527_v57, 7  ;;  %v544_v0 = vrot.slane %v526_v60, 7  ;;  %v1951_v23 = vrot.slane %v3293_v54, 2  ;;  %v1950_v25 = vrot.slane %v3313_v10, 2 }
 0x1c9   : > { %v505_v1 = vpop.permute.xlu1 %504  ;;  %v503_v2 = vpop.permute.xlu0 %502 }
 0x1ca   : > { %v3308_v7 = vsel %vm343_vm2, %v545_v59, 0.0  ;;  %v521_v8 = vsel %vm229_vm0, 0.0, %v505_v1  ;;  %v520_v9 = vsel %vm229_vm0, 0.0, %v503_v2  ;;  %v3317_v12 = vsel %vm343_vm2, %v544_v0, %v545_v59 }
 0x1cb   : > { %v1958_v11 = vrot.slane %v3308_v7, 2  ;;  %v3320_v13 = vsel %vm343_vm2, 0.0, %v544_v0  ;;  %v529_v14 = vsel %vm238_vm1, %v521_v8, 0.0  ;;  %v528_v15 = vsel %vm238_vm1, %v520_v9, 0.0  ;;  %797 = vrot.lane.b32.xlu1 %v3317_v12, %s3028_s6 }
 0x1cc   : > { %v1956_v16 = vrot.slane %v3317_v12, 2  ;;  %v1955_v17 = vrot.slane %v3320_v13, 2  ;;  %v548_v20 = vrot.slane %v529_v14, 7  ;;  %v547_v21 = vrot.slane %v528_v15, 7 }
 0x1cd   : > { %v3368_v39 = vsel %vm445_vm4, %v1951_v23, %v1953_v19  ;;  %v3378_v43 = vsel %vm445_vm4, %v1950_v25, %v1951_v23  ;;  %v570_v48 = vcombine.low %v3290_v53, %v3320_v13  ;;  %v571_v50 = vcombine.high %v3290_v53, %v3320_v13 }
 0x1ce   : > { %v3333_v3 = vsel %vm445_vm4, %v1956_v16, %v1958_v11  ;;  %v3337_v24 = vsel %vm445_vm4, %v1955_v17, %v1956_v16  ;;  %v3341_v26 = vsel %vm343_vm2, %v548_v20, 0.0  ;;  %v3344_v27 = vsel %vm343_vm2, %v547_v21, %v548_v20 }
 0x1cf   : > { %v3347_v28 = vsel %vm343_vm2, 0.0, %v547_v21  ;;  %v2041_v29 = vcombine.low %v3330_v22, %v3333_v3  ;;  %v1963_v18 = vrot.slane %v3341_v26, 2  ;;  %1019 = vrot.lane.b32.xlu1 %v3278_v42, %s3027_s23  ;;  %801 = vrot.lane.b32.xlu0 %v3344_v27, %s3028_s6  ;;  %v2042_v30 = vcombine.high %v3330_v22, %v3333_v3 }
 0x1d0   : > { %v1961_v34 = vrot.slane %v3344_v27, 2  ;;  %v1974_v37 = vcombine.high %v3359_v32, %v3337_v24  ;;  %v1960_v38 = vrot.slane %v3347_v28, 2  ;;  %v586_v49 = vcombine.low %v3313_v10, %v3347_v28 }
 0x1d1   : > { %v3403_v47 = vrot.slane %v570_v48, %v3390_v46  ;;  %v587_v55 = vcombine.high %v3313_v10, %v3347_v28  ;;  %v638_v57 = vcombine.low %v3278_v42, %v3317_v12  ;;  %v654_v58 = vcombine.low %v3293_v54, %v3344_v27 }
 0x1d2   : > { %v3371_v40 = vsel %vm445_vm4, %v1961_v34, %v1963_v18  ;;  %v3381_v44 = vsel %vm445_vm4, %v1960_v38, %v1961_v34  ;;  %v3406_v51 = vrot.slane %v586_v49, %v3390_v46  ;;  %v639_v59 = vcombine.high %v3278_v42, %v3317_v12 }
 0x1d3   : > { %v2057_v41 = vcombine.low %v3368_v39, %v3371_v40  ;;  %v2058_v31 = vcombine.high %v3368_v39, %v3371_v40  ;;  %1027 = vrot.lane.b32.xlu1 %v3317_v12, %s3027_s23  ;;  %1023 = vrot.lane.b32.xlu0 %v3293_v54, %s3027_s23  ;;  %v1990_v45 = vcombine.high %v3378_v43, %v3381_v44  ;;  %v1252_v38 = vrot.slane %v3278_v42, 1 }
 0x1d4   : > { %v655_v60 = vcombine.high %v3293_v54, %v3344_v27  ;;  %v603_v61 = vcombine.high %v3403_v47, %v3406_v51  ;;  %v3421_v62 = vrot.slane %v571_v50, %v3390_v46  ;;  %v3424_v63 = vrot.slane %v587_v55, %v3390_v46 }
 0x1d5   : > { %v602_v56 = vcombine.low %v3403_v47, %v3406_v51  ;;  %v3433_v0 = vrot.slane %v638_v57, %v3390_v46  ;;  %v3436_v1 = vrot.slane %v654_v58, %v3390_v46  ;;  %v3441_v4 = vrot.slane %v639_v59, %v3390_v46 }
 0x1d6   : > { %4871 = vst [vmem:[#allocation8_spill] sm:$0xff] %v3421_v62  ;;  %4872 = vst [vmem:[#allocation9_spill] sm:$0xff] %v3424_v63  ;;  %v618_v2 = vcombine.low %v3421_v62, %v3424_v63  ;;  %v3444_v5 = vrot.slane %v655_v60, %v3390_v46  ;;  %v3457_v14 = vrot.slane %v1974_v37, %v3390_v46  ;;  %v1254_v37 = vrot.slane %v3287_v52, 1 }
 0x1d7   : > { %787 = vrot.lane.b32.xlu1 %v3290_v53, %s3028_s6  ;;  %1031 = vrot.lane.b32.xlu0 %v3344_v27, %s3027_s23  ;;  %v671_v8 = vcombine.high %v3433_v0, %v3436_v1  ;;  %v3460_v15 = vrot.slane %v1990_v45, %v3390_v46  ;;  %v670_v17 = vcombine.low %v3433_v0, %v3436_v1  ;;  %v1262_v45 = vrot.slane %v3317_v12, 1 }
 0x1d8   : > { %v686_v9 = vcombine.low %v3441_v4, %v3444_v5  ;;  %v687_v11 = vcombine.high %v3441_v4, %v3444_v5  ;;  %v3473_v20 = vrot.slane %v2058_v31, %v3390_v46  ;;  %v3476_v21 = vrot.slane %v2041_v29, %v3390_v46 }
 0x1d9   : > { %v2021_v16 = vcombine.low %v3457_v14, %v3460_v15  ;;  %v2022_v19 = vcombine.high %v3457_v14, %v3460_v15  ;;  %v3479_v23 = vrot.slane %v2057_v41, %v3390_v46  ;;  %v3486_v25 = vrot.slane %v2042_v30, %v3390_v46 }
 0x1da   : > { %v3521_v41 = vsel %vm400_vm3, %v1252_v38, %v1254_v37  ;;  %v1259_v31 = vrot.slane %v3305_v6, 1  ;;  %v1257_v48 = vrot.slane %v3293_v54, 1  ;;  %v1269_v42 = vrot.slane %v3341_v26, 1 }
 0x1db   : > { %795 = vrot.lane.b32.xlu1 %v3320_v13, %s3028_s6  ;;  %791 = vrot.lane.b32.xlu0 %v3313_v10, %s3028_s6  ;;  %v2073_v18 = vcombine.low %v3476_v21, %v3479_v23  ;;  %v2074_v34 = vcombine.high %v3476_v21, %v3479_v23  ;;  %v2089_v29 = vcombine.low %v3486_v25, %v3473_v20  ;;  %v1267_v6 = vrot.slane %v3344_v27, 1 }
 0x1dc   : > { %v2090_v35 = vcombine.high %v3486_v25, %v3473_v20  ;;  %v1261_v26 = vrot.slane %v3320_v13, 1  ;;  %v1256_v27 = vrot.slane %v3313_v10, 1  ;;  %v1989_v57 = vcombine.low %v3378_v43, %v3381_v44 }
 0x1dd   : > { %v3544_v54 = vsel %vm400_vm3, %v1267_v6, %v1269_v42  ;;  %v1973_v59 = vcombine.low %v3359_v32, %v3337_v24 }
 0x1df   : > { %1017 = vrot.lane.b32.xlu1 %v3290_v53, %s3027_s23  ;;  %799 = vrot.lane.b32.xlu0 %v3347_v28, %s3028_s6 }
 0x1e3   : > { %1025 = vrot.lane.b32.xlu1 %v3320_v13, %s3027_s23  ;;  %1021 = vrot.lane.b32.xlu0 %v3313_v10, %s3027_s23  ;;  %v3031_v13 = vmov 1934713408  }
 0x1e4   : > { %v605_v49 = vunpack.c.l.s4 %v3031_v13 }
 0x1e7   : > { %2181 = vrot.lane.b32.xlu1 %v3330_v22, %s3028_s6  ;;  %1029 = vrot.lane.b32.xlu0 %v3347_v28, %s3027_s23 }
 0x1eb   : > { %2189 = vrot.lane.b32.xlu1 %v3333_v3, %s3028_s6  ;;  %2185 = vrot.lane.b32.xlu0 %v3368_v39, %s3028_s6 }
 0x1ef   : > { %2179 = vrot.lane.b32.xlu1 %v3359_v32, %s3028_s6  ;;  %2193 = vrot.lane.b32.xlu0 %v3371_v40, %s3028_s6 }
 0x1f3   : > { %2187 = vrot.lane.b32.xlu1 %v3337_v24, %s3028_s6  ;;  %2183 = vrot.lane.b32.xlu0 %v3378_v43, %s3028_s6 }
 0x1f7   : > { %2411 = vrot.lane.b32.xlu1 %v3330_v22, %s3027_s23  ;;  %2191 = vrot.lane.b32.xlu0 %v3381_v44, %s3028_s6  ;;  %v1264_v22 = vrot.slane %v3308_v7, 1  ;;  %v1251_v7 = vrot.slane %v3290_v53, 1  ;;  %v3565_v53 = vsel %vm400_vm3, %v1261_v26, %v1262_v45 }
 0x1f9   : > { %v3533_v52 = vsel %vm400_vm3, %v1262_v45, %v1264_v22  ;;  %v3556_v12 = vsel %vm400_vm3, %v1251_v7, %v1252_v38 }
 0x1fb   : > { %2419 = vrot.lane.b32.xlu1 %v3333_v3, %s3027_s23  ;;  %2415 = vrot.lane.b32.xlu0 %v3368_v39, %s3027_s23  ;;  %v3536_v3 = vsel %vm400_vm3, %v1257_v48, %v1259_v31  ;;  %v1258_v39 = vsel %vm400_vm3, %v1256_v27, %v1257_v48 }
 0x1ff   : > { %1717 = vrot.lane.b32.xlu1 %v3521_v41, %s3027_s23  ;;  %2423 = vrot.lane.b32.xlu0 %v3371_v40, %s3027_s23  ;;  %v1266_v40 = vrot.slane %v3347_v28, 1  ;;  %v606_v28 = vunpack.c.0.s8 %v605_v49 }
 0x201   : > { %v1268_v10 = vsel %vm400_vm3, %v1266_v40, %v1267_v6  ;;  %v3585_v50 = vsub.s32 %v606_v28, %v3362_v36  ;;  %v1363_v6 = vcombine.low %v3536_v3, %v3544_v54  ;;  %v1347_v40 = vcombine.low %v3521_v41, %v3533_v52 }
 0x202   : > { %v1295_v60 = vcombine.low %v1258_v39, %v1268_v10  ;;  %v1296_v51 = vcombine.high %v1258_v39, %v1268_v10  ;;  %v1364_v28 = vcombine.high %v3536_v3, %v3544_v54 }
 0x203   : > { %1725 = vrot.lane.b32.xlu1 %v3533_v52, %s3027_s23  ;;  %1721 = vrot.lane.b32.xlu0 %v3536_v3, %s3027_s23  ;;  %v617_v55 = vrot.slane %v603_v61, %v3585_v50  ;;  %v626_v36 = vrot.slane %v618_v2, %v3585_v50  ;;  %v685_v58 = vrot.slane %v671_v8, %v3585_v50 }
 0x204   : > { %v1997_v61 = vrot.slane %v1989_v57, %v3390_v46  ;;  %v1279_v2 = vcombine.low %v3556_v12, %v3565_v53  ;;  %v3631_v8 = vrot.slane %v687_v11, %v3585_v50  ;;  %v3635_v38 = vrot.slane %v1295_v60, %v3390_v46 }
 0x205   : > { %v1280_v11 = vcombine.high %v3556_v12, %v3565_v53  ;;  %v635_v22 = vcombine.high %v617_v55, %v4844_v33  ;;  %v3659_v48 = vrot.slane %v1296_v51, %v3390_v46  ;;  %v636_v26 = vcombine.high %v626_v36, %v4844_v33 }
 0x206   : > { %4874 = vst [vmem:[#allocation11_spill] sm:$0xff] %v3631_v8  ;;  %v1287_v47 = vrot.slane %v1279_v2, %v3390_v46  ;;  %v3678_v27 = vrot.slane %v2021_v16, %v3585_v50  ;;  %v1371_v1 = vrot.slane %v1363_v6, %v3390_v46  ;;  %v3783_v6 = vrot.slane %v2090_v35, %v3585_v50 }
 0x207   : > { %2409 = vrot.lane.b32.xlu1 %v3359_v32, %s3027_s23  ;;  %1729 = vrot.lane.b32.xlu0 %v3544_v54, %s3027_s23  ;;  %v3625_v32 = vrot.slane %v602_v56, %v3585_v50  ;;  %v3665_v42 = vrot.slane %v1280_v11, %v3390_v46 }
 0x208   : > { %v1312_v5 = vcombine.high %v1287_v47, %v3635_v38  ;;  %v1311_v14 = vcombine.low %v1287_v47, %v3635_v38  ;;  %v2039_v25 = vcombine.high %v3678_v27, %v4844_v33 }
 0x209   : > { %4873 = vst [vmem:[#allocation10_spill] sm:$0xff] %v3625_v32  ;;  %v634_v56 = vcombine.high %v3625_v32, %v4844_v33  ;;  %v1328_v20 = vcombine.high %v3665_v42, %v3659_v48 }
 0x20a   : > { %v3656_v45 = vrot.slane %v1312_v5, %v3585_v50 }
 0x20b   : > { %2417 = vrot.lane.b32.xlu1 %v3337_v24, %s3027_s23  ;;  %2413 = vrot.lane.b32.xlu0 %v3378_v43, %s3027_s23  ;;  %v694_v43 = vrot.slane %v686_v9, %v3585_v50  ;;  %v1981_v24 = vrot.slane %v1973_v59, %v3390_v46  ;;  %v2088_v59 = vrot.slane %v2074_v34, %v3585_v50 }
 0x20d   : > { %v704_v9 = vcombine.high %v694_v43, %v4844_v33  ;;  %v2006_v37 = vcombine.high %v1981_v24, %v1997_v61  ;;  %v2106_v23 = vcombine.high %v2088_v59, %v4844_v33 }
 0x20f   : > { %1715 = vrot.lane.b32.xlu1 %v3556_v12, %s3027_s23  ;;  %2421 = vrot.lane.b32.xlu0 %v3381_v44, %s3027_s23  ;;  %v703_v44 = vcombine.high %v685_v58, %v4844_v33  ;;  %v3644_v4 = vrot.slane %v2006_v37, %v3585_v50  ;;  %v3756_v37 = vrot.slane %v1311_v14, %v3585_v50 }
 0x213   : > { %1723 = vrot.lane.b32.xlu1 %v3565_v53, %s3027_s23  ;;  %1719 = vrot.lane.b32.xlu0 %v1258_v39, %s3027_s23 }
 0x217   : > { %1487 = vrot.lane.b32.xlu1 %v3521_v41, %s3028_s6  ;;  %1727 = vrot.lane.b32.xlu0 %v1268_v10, %s3027_s23 }
 0x21b   : > { %1495 = vrot.lane.b32.xlu1 %v3533_v52, %s3028_s6  ;;  %1491 = vrot.lane.b32.xlu0 %v3536_v3, %s3028_s6 }
 0x21f   : > { %1485 = vrot.lane.b32.xlu1 %v3556_v12, %s3028_s6  ;;  %1499 = vrot.lane.b32.xlu0 %v3544_v54, %s3028_s6  ;;  %v1348_v54 = vcombine.high %v3521_v41, %v3533_v52 }
 0x221   : > { %v1362_v52 = vrot.slane %v1348_v54, %v3390_v46 }
 0x223   : > { %1493 = vrot.lane.b32.xlu1 %v3565_v53, %s3028_s6  ;;  %1489 = vrot.lane.b32.xlu0 %v1258_v39, %s3028_s6  ;;  %v1327_v53 = vcombine.low %v3665_v42, %v3659_v48  ;;  %v3686_v39 = vrot.slane %v670_v17, %v3585_v50  ;;  %v1355_v17 = vrot.slane %v1347_v40, %v3390_v46 }
 0x225   : > { %4875 = vst [vmem:[#allocation12_spill] sm:$0xff] %v3686_v39  ;;  %v1335_v49 = vrot.slane %v1327_v53, %v3585_v50  ;;  %v702_v0 = vcombine.high %v3686_v39, %v4844_v33  ;;  %v1379_v60 = vcombine.low %v1355_v17, %v1371_v1  ;;  %v1380_v3 = vcombine.high %v1355_v17, %v1371_v1 }
 0x226   : > { %v1344_v53 = vcombine.high %v3656_v45, %v4844_v33  ;;  %v3810_v1 = vrot.slane %v2073_v18, %v3585_v50 }
 0x227   : > { %711 = vrot.lane.b32.xlu1 %v617_v55, %s3032_s7  ;;  %1497 = vrot.lane.b32.xlu0 %v1268_v10, %s3028_s6  ;;  %v2005_v10 = vcombine.low %v1981_v24, %v1997_v61  ;;  %v3738_v41 = vrot.slane %v1379_v60, %v3585_v50  ;;  %v1345_v48 = vcombine.high %v1335_v49, %v4844_v33 }
 0x229   : > { %v3707_v55 = vrot.slane %v2005_v10, %v3585_v50  ;;  %v1411_v24 = vcombine.high %v3738_v41, %v4844_v33 }
 0x22b   : > { %719 = vrot.lane.b32.xlu1 %v626_v36, %s3033_s8  ;;  %739 = vrot.lane.b32.xlu0 %v685_v58, %s3032_s7  ;;  %v3717_v58 = vrot.slane %v2022_v19, %v3585_v50  ;;  %v2037_v34 = vcombine.high %v3707_v55, %v4844_v33 }
 0x22f   : > { %747 = vrot.lane.b32.xlu0 %v694_v43, %s3033_s8  ;;  %743 = vrot.lane.b32.xlu1 %v703_v44, %s3034_s17  ;;  %v1378_v43 = vrot.slane %v1364_v28, %v3390_v46  ;;  %v1394_v44 = vrot.slane %v1380_v3, %v3585_v50  ;;  %v2105_v28 = vcombine.high %v3810_v1, %v4844_v33 }
 0x231   : > { %v1395_v38 = vcombine.low %v1362_v52, %v1378_v43 }
 0x233   : > { %755 = vrot.lane.b32.xlu0 %v3631_v8, %s3035_s19  ;;  %751 = vrot.lane.b32.xlu1 %v704_v9, %s3036_s20  ;;  %v3652_v31 = vpop.permute.xlu1 %789  ;;  %v3753_v9 = vrot.slane %v2089_v29, %v3585_v50  ;;  %v3768_v5 = vrot.slane %v1395_v38, %v3585_v50  ;;  %v2038_v29 = vcombine.high %v3644_v4, %v4844_v33 }
 0x237   : > { %707 = vrot.lane.b32.xlu0 %v634_v56, %s3037_s22  ;;  %2114 = vrot.lane.b32.xlu1 %v3644_v4, %s3032_s7  ;;  %v1343_v56 = vcombine.high %v3756_v37, %v4844_v33 }
 0x239   : > { %v3669_v7 = vpop.permute.xlu0 %793 }
 0x23b   : > { %715 = vrot.lane.b32.xlu0 %v635_v22, %s3034_s17  ;;  %1420 = vrot.lane.b32.xlu1 %v3656_v45, %s3032_s7  ;;  %v1342_v45 = vrot.slane %v1328_v20, %v3585_v50 }
 0x23d   : > { %v3671_v12 = vpop.permute.xlu1 %797 }
 0x23e   : > { %v879_v14 = vcombine.low %v3652_v31, %v3671_v12 }
 0x23f   : > { %723 = vrot.lane.b32.xlu0 %v636_v26, %s3036_s20  ;;  %2122 = vrot.lane.b32.xlu1 %v3678_v27, %s3033_s8  ;;  %v1396_v26 = vcombine.high %v1362_v52, %v1378_v43  ;;  %v1412_v52 = vcombine.high %v1394_v44, %v4844_v33 }
 0x241   : > { %v3693_v16 = vpop.permute.xlu1 %1019  ;;  %v3695_v13 = vpop.permute.xlu0 %801  ;;  %v1410_v10 = vrot.slane %v1396_v26, %v3585_v50 }
 0x242   : > { %v895_v18 = vcombine.low %v3669_v7, %v3695_v13 }
 0x243   : > { %1428 = vrot.lane.b32.xlu1 %v1335_v49, %s3033_s8  ;;  %735 = vrot.lane.b32.xlu0 %v702_v0, %s3037_s22  ;;  %v1414_v43 = vcombine.high %v1410_v10, %v4844_v33 }
 0x245   : > { %v3709_v57 = vpop.permute.xlu1 %1027  ;;  %v3711_v36 = vpop.permute.xlu0 %1023 }
 0x247   : > { %2130 = vrot.lane.b32.xlu1 %v3717_v58, %s3035_s19  ;;  %2142 = vrot.lane.b32.xlu0 %v2088_v59, %s3032_s7 }
 0x249   : > { %v3730_v15 = vpop.permute.xlu1 %787  ;;  %v3732_v19 = vpop.permute.xlu0 %1031 }
 0x24b   : > { %2110 = vrot.lane.b32.xlu1 %v2037_v34, %s3037_s22  ;;  %1448 = vrot.lane.b32.xlu0 %v1394_v44, %s3032_s7 }
 0x24d   : > { %v3743_v61 = vpop.permute.xlu1 %795  ;;  %v3745_v2 = vpop.permute.xlu0 %791 }
 0x24e   : > { %v811_v21 = vcombine.low %v3730_v15, %v3743_v61 }
 0x24f   : > { %1444 = vrot.lane.b32.xlu1 %v1411_v24, %s3037_s22  ;;  %2150 = vrot.lane.b32.xlu0 %v3753_v9, %s3033_s8  ;;  %v903_v24 = vrot.slane %v895_v18, %v3390_v46 }
 0x250   : > { %v819_v34 = vrot.slane %v811_v21, %v3390_v46 }
 0x251   : > { %v3761_v47 = vpop.permute.xlu1 %1017  ;;  %v3763_v51 = vpop.permute.xlu0 %799 }
 0x252   : > { %v827_v42 = vcombine.low %v3745_v2, %v3763_v51 }
 0x253   : > { %1416 = vrot.lane.b32.xlu1 %v1343_v56, %s3037_s22  ;;  %1456 = vrot.lane.b32.xlu0 %v3768_v5, %s3033_s8 }
 0x254   : > { %v835_v49 = vrot.slane %v827_v42, %v3390_v46 }
 0x255   : > { %v3775_v11 = vpop.permute.xlu1 %1025  ;;  %v3777_v22 = vpop.permute.xlu0 %1021 }
 0x256   : > { %v1041_v59 = vcombine.low %v3761_v47, %v3775_v11  ;;  %v844_v38 = vcombine.high %v819_v34, %v835_v49 }
 0x257   : > { %2118 = vrot.lane.b32.xlu1 %v2038_v29, %s3034_s17  ;;  %2158 = vrot.lane.b32.xlu0 %v3783_v6, %s3035_s19 }
 0x258   : > { %v1049_v20 = vrot.slane %v1041_v59, %v3390_v46  ;;  %v858_v21 = vrot.slane %v844_v38, %v3585_v50 }
 0x259   : > { %v3790_v4 = vpop.permute.xlu1 %2181  ;;  %v3792_v40 = vpop.permute.xlu0 %1029 }
 0x25a   : > { %v1057_v60 = vcombine.low %v3777_v22, %v3792_v40 }
 0x25b   : > { %1424 = vrot.lane.b32.xlu1 %v1344_v53, %s3034_s17  ;;  %1464 = vrot.lane.b32.xlu0 %v1410_v10, %s3035_s19  ;;  %v1346_v53 = vcombine.high %v1342_v45, %v4844_v33  ;;  %v887_v10 = vrot.slane %v879_v14, %v3390_v46 }
 0x25c   : > { %v1065_v56 = vrot.slane %v1057_v60, %v3390_v46  ;;  %v1413_v60 = vcombine.high %v3768_v5, %v4844_v33 }
 0x25d   : > { %v3801_v35 = vpop.permute.xlu1 %2189  ;;  %v3803_v0 = vpop.permute.xlu0 %2185  ;;  %v911_v44 = vcombine.low %v887_v10, %v903_v24 }
 0x25f   : > { %2126 = vrot.lane.b32.xlu1 %v2039_v25, %s3036_s20  ;;  %1436 = vrot.lane.b32.xlu0 %v1342_v45, %s3035_s19  ;;  %v1074_v25 = vcombine.high %v1049_v20, %v1065_v56  ;;  %v843_v45 = vcombine.low %v819_v34, %v835_v49  ;;  %v3874_v14 = vrot.slane %v911_v44, %v3585_v50 }
 0x260   : > { %v1125_v49 = vcombine.low %v3711_v36, %v3732_v19  ;;  %v1073_v34 = vcombine.low %v1049_v20, %v1065_v56  ;;  %v2040_v56 = vcombine.high %v3717_v58, %v4844_v33  ;;  %v912_v20 = vcombine.high %v887_v10, %v903_v24 }
 0x261   : > { %v3817_v27 = vpop.permute.xlu1 %2179  ;;  %v3819_v17 = vpop.permute.xlu0 %2193  ;;  %4876 = vst [vmem:[#allocation13_spill] sm:$0xff] %v3874_v14  ;;  %v943_v5 = vcombine.high %v3874_v14, %v4844_v33  ;;  %v3889_v38 = vrot.slane %v843_v45, %v3585_v50  ;;  %v1126_v24 = vcombine.high %v3711_v36, %v3732_v19 }
 0x262   : > { %v3900_v44 = vrot.slane %v1125_v49, %v3390_v46 }
 0x263   : > { %1432 = vrot.lane.b32.xlu1 %v1345_v48, %s3036_s20  ;;  %2138 = vrot.lane.b32.xlu0 %v2105_v28, %s3037_s22  ;;  %v2107_v28 = vcombine.high %v3753_v9, %v4844_v33  ;;  %v2108_v9 = vcombine.high %v3783_v6, %v4844_v33  ;;  %4877 = vst [vmem:[#allocation14_spill] sm:$0xff] %v3889_v38 }
 0x264   : > { %v896_v6 = vcombine.high %v3669_v7, %v3695_v13  ;;  %v875_v45 = vcombine.high %v3889_v38, %v4844_v33  ;;  %v880_v7 = vcombine.high %v3652_v31, %v3671_v12  ;;  %v3928_v31 = vrot.slane %v912_v20, %v3585_v50 }
 0x265   : > { %v3833_v3 = vpop.permute.xlu1 %2187  ;;  %v3835_v54 = vpop.permute.xlu0 %2183  ;;  %v1140_v19 = vrot.slane %v1126_v24, %v3390_v46  ;;  %v1058_v24 = vcombine.high %v3777_v22, %v3792_v40 }
 0x266   : > { %v910_v58 = vrot.slane %v896_v6, %v3390_v46 }
 0x267   : > { %1468 = vrot.lane.b32.xlu1 %v1414_v43, %s3038_s26  ;;  %2146 = vrot.lane.b32.xlu0 %v2106_v23, %s3034_s17  ;;  %v1088_v43 = vrot.slane %v1074_v25, %v3585_v50 }
 0x269   : > { %v3848_v29 = vpop.permute.xlu1 %2411  ;;  %v3850_v26 = vpop.permute.xlu0 %2191 }
 0x26b   : > { %1440 = vrot.lane.b32.xlu1 %v1346_v53, %s3038_s26  ;;  %1452 = vrot.lane.b32.xlu0 %v1412_v52, %s3034_s17  ;;  %v1109_v53 = vcombine.low %v3693_v16, %v3709_v57 }
 0x26d   : > { %v3857_v48 = vpop.permute.xlu1 %2419  ;;  %v3859_v42 = vpop.permute.xlu0 %2415  ;;  %v3914_v13 = vrot.slane %v1109_v53, %v3390_v46  ;;  %v828_v53 = vcombine.high %v3745_v2, %v3763_v51 }
 0x26f   : > { %2154 = vrot.lane.b32.xlu0 %v2107_v28, %s3036_s20  ;;  %952 = vrot.lane.b32.xlu1 %v858_v21, %s3032_s7  ;;  %v1142_v10 = vcombine.high %v3914_v13, %v3900_v44 }
 0x271   : > { %v3866_v23 = vpop.permute.xlu1 %1717  ;;  %v3868_v18 = vpop.permute.xlu0 %2423  ;;  %v3946_v20 = vrot.slane %v1142_v10, %v3585_v50 }
 0x273   : > { %1460 = vrot.lane.b32.xlu0 %v1413_v60, %s3036_s20  ;;  %1182 = vrot.lane.b32.xlu1 %v1088_v43, %s3032_s7  ;;  %v3909_v60 = vrot.slane %v1073_v34, %v3585_v50  ;;  %v894_v34 = vrot.slane %v880_v7, %v3390_v46  ;;  %v842_v7 = vrot.slane %v828_v53, %v3390_v46 }
 0x275   : > { %v3882_v59 = vpop.permute.xlu1 %1725  ;;  %v3884_v52 = vpop.permute.xlu0 %1721  ;;  %4878 = vst [vmem:[#allocation15_spill] sm:$0xff] %v3909_v60  ;;  %v1105_v12 = vcombine.high %v3909_v60, %v4844_v33  ;;  %v927_v36 = vcombine.low %v894_v34, %v910_v58 }
 0x277   : > { %2162 = vrot.lane.b32.xlu0 %v2108_v9, %s3038_s26  ;;  %976 = vrot.lane.b32.xlu1 %v943_v5, %s3037_s22  ;;  %v1110_v5 = vcombine.high %v3693_v16, %v3709_v57  ;;  %v876_v16 = vcombine.high %v858_v21, %v4844_v33  ;;  %v935_v2 = vrot.slane %v927_v36, %v3585_v50 }
 0x278   : > { %v1072_v36 = vrot.slane %v1058_v24, %v3390_v46 }
 0x279   : > { %v3902_v25 = vpop.permute.xlu1 %2409  ;;  %v3904_v28 = vpop.permute.xlu0 %1729  ;;  %v1124_v57 = vrot.slane %v1110_v5, %v3390_v46 }
 0x27b   : > { %2134 = vrot.lane.b32.xlu0 %v2040_v56, %s3038_s26  ;;  %948 = vrot.lane.b32.xlu1 %v875_v45, %s3037_s22  ;;  %v812_v45 = vcombine.high %v3730_v15, %v3743_v61  ;;  %v1157_v51 = vcombine.low %v1124_v57, %v1140_v19  ;;  %v1042_v61 = vcombine.high %v3761_v47, %v3775_v11 }
 0x27d   : > { %v3923_v9 = vpop.permute.xlu1 %2417  ;;  %v3925_v49 = vpop.permute.xlu0 %2413  ;;  %v826_v15 = vrot.slane %v812_v45, %v3390_v46  ;;  %v1165_v40 = vrot.slane %v1157_v51, %v3585_v50 }
 0x27f   : > { %980 = vrot.lane.b32.xlu0 %v3928_v31, %s3032_s7  ;;  %1178 = vrot.lane.b32.xlu1 %v1105_v12, %s3037_s22  ;;  %v1106_v12 = vcombine.high %v1088_v43, %v4844_v33  ;;  %v859_v5 = vcombine.low %v826_v15, %v842_v7  ;;  %v945_v43 = vcombine.high %v935_v2, %v4844_v33 }
 0x281   : > { %v3941_v6 = vpop.permute.xlu1 %1715  ;;  %v3943_v56 = vpop.permute.xlu0 %2421  ;;  %v867_v24 = vrot.slane %v859_v5, %v3585_v50  ;;  %v1158_v5 = vcombine.high %v1124_v57, %v1140_v19 }
 0x283   : > { %1210 = vrot.lane.b32.xlu0 %v3946_v20, %s3032_s7  ;;  %956 = vrot.lane.b32.xlu1 %v876_v16, %s3034_s17  ;;  %v1056_v16 = vrot.slane %v1042_v61, %v3390_v46  ;;  %v877_v30 = vcombine.high %v867_v24, %v4844_v33  ;;  %v1172_v19 = vrot.slane %v1158_v5, %v3585_v50 }
 0x284   : > { %v2219_v5 = vcombine.low %v3835_v54, %v3850_v26 }
 0x285   : > { %v3959_v10 = vpop.permute.xlu1 %1723  ;;  %v3961_v21 = vpop.permute.xlu0 %1719  ;;  %v1089_v47 = vcombine.low %v1056_v16, %v1072_v36 }
 0x286   : > { %v1739_v8 = vcombine.low %v3941_v6, %v3959_v10  ;;  %v1740_v38 = vcombine.high %v3941_v6, %v3959_v10 }
 0x287   : > { %988 = vrot.lane.b32.xlu0 %v935_v2, %s3033_s8  ;;  %1186 = vrot.lane.b32.xlu1 %v1106_v12, %s3034_s17  ;;  %v1175_v12 = vcombine.high %v1165_v40, %v4844_v33  ;;  %v928_v2 = vcombine.high %v894_v34, %v910_v58  ;;  %v860_v34 = vcombine.high %v826_v15, %v842_v7 }
 0x288   : > { %v1141_v7 = vcombine.low %v3914_v13, %v3900_v44  ;;  %v2203_v44 = vcombine.low %v3817_v27, %v3833_v3 }
 0x289   : > { %v3970_v53 = vpop.permute.xlu1 %1487  ;;  %v3972_v22 = vpop.permute.xlu0 %1727  ;;  %v874_v15 = vrot.slane %v860_v34, %v3585_v50  ;;  %v4042_v34 = vrot.slane %v2219_v5, %v3390_v46 }
 0x28b   : > { %1218 = vrot.lane.b32.xlu0 %v1165_v40, %s3033_s8  ;;  %992 = vrot.lane.b32.xlu1 %v945_v43, %s3036_s20  ;;  %v1097_v43 = vrot.slane %v1089_v47, %v3585_v50  ;;  %v2287_v47 = vcombine.low %v3803_v0, %v3819_v17 }
 0x28d   : > { %v3979_v11 = vpop.permute.xlu1 %1495  ;;  %v3981_v45 = vpop.permute.xlu0 %1491  ;;  %v1107_v58 = vcombine.high %v1097_v43, %v4844_v33 }
 0x28f   : > { %960 = vrot.lane.b32.xlu0 %v867_v24, %s3033_s8  ;;  %1222 = vrot.lane.b32.xlu1 %v1175_v12, %s3036_s20  ;;  %v942_v12 = vrot.slane %v928_v2, %v3585_v50  ;;  %v2271_v2 = vcombine.low %v3790_v4, %v3801_v35 }
 0x291   : > { %v3987_v51 = vpop.permute.xlu1 %1485  ;;  %v3989_v61 = vpop.permute.xlu0 %1499  ;;  %v946_v57 = vcombine.high %v942_v12, %v4844_v33 }
 0x292   : > { %v1593_v6 = vcombine.low %v3981_v45, %v3989_v61 }
 0x293   : > { %1190 = vrot.lane.b32.xlu0 %v1097_v43, %s3033_s8  ;;  %964 = vrot.lane.b32.xlu1 %v877_v30, %s3036_s20  ;;  %v1090_v43 = vcombine.high %v1056_v16, %v1072_v36  ;;  %v4037_v36 = vrot.slane %v1141_v7, %v3585_v50  ;;  %v2433_v7 = vcombine.low %v3902_v25, %v3923_v9 }
 0x295   : > { %v3995_v32 = vpop.permute.xlu1 %1493  ;;  %v3997_v40 = vpop.permute.xlu0 %1489  ;;  %4883 = vst [vmem:[#allocation19_spill] sm:$0xff] %v4037_v36 }
 0x297   : > { %996 = vrot.lane.b32.xlu0 %v942_v12, %s3035_s19  ;;  %1194 = vrot.lane.b32.xlu1 %v1107_v58, %s3036_s20  ;;  %v4019_v58 = vrot.slane %v2287_v47, %v3390_v46  ;;  %v2449_v47 = vcombine.low %v3925_v49, %v3943_v56 }
 0x299   : > { %v4005_v24 = vpop.permute.xlu1 %711  ;;  %v4007_v30 = vpop.permute.xlu0 %1497 }
 0x29a   : > { %4879 = vst [vmem:[#allocation16_spill] sm:$0xff] %v4005_v24  ;;  %v4882_v24 = vmov 0.0  }
 0x29b   : > { %1226 = vrot.lane.b32.xlu0 %v1172_v19, %s3035_s19  ;;  %1000 = vrot.lane.b32.xlu1 %v946_v57, %s3038_s26  ;;  %v1176_v39 = vcombine.high %v1172_v19, %v4882_v24  ;;  %v4029_v57 = vrot.slane %v2271_v2, %v3390_v46  ;;  %v878_v13 = vcombine.high %v874_v15, %v4882_v24 }
 0x29c   : > { %v1173_v5 = vcombine.high %v4037_v36, %v4882_v24 }
 0x29d   : > { %v4023_v12 = vpop.permute.xlu1 %719  ;;  %v4025_v33 = vpop.permute.xlu0 %739  ;;  %v2304_v16 = vcombine.high %v4029_v57, %v4019_v58 }
 0x29e   : > { %4880 = vst [vmem:[#allocation17_spill] sm:$0xff] %v4023_v12  ;;  %4881 = vst [vmem:[#allocation18_spill] sm:$0xff] %v4025_v33 }
 0x29f   : > { %968 = vrot.lane.b32.xlu0 %v874_v15, %s3035_s19  ;;  %1230 = vrot.lane.b32.xlu1 %v1176_v39, %s3038_s26  ;;  %v1104_v39 = vrot.slane %v1090_v43, %v3585_v50  ;;  %v4052_v15 = vrot.slane %v2203_v44, %v3390_v46  ;;  %v1755_v43 = vcombine.low %v3961_v21, %v3972_v22 }
 0x2a0   : > { %v4072_v33 = vrot.slane %v2304_v16, %v3585_v50  ;;  %v2517_v16 = vcombine.low %v3859_v42, %v3868_v18 }
 0x2a1   : > { %v4046_v19 = vpop.permute.xlu1 %743  ;;  %v4048_v2 = vpop.permute.xlu0 %747  ;;  %v2236_v12 = vcombine.high %v4052_v15, %v4042_v34 }
 0x2a2   : > { %4884 = vst [vmem:[#allocation20_spill] sm:$0xff] %v4046_v19  ;;  %4885 = vst [vmem:[#allocation21_spill] sm:$0xff] %v4048_v2  ;;  %v4063_v2 = vrot.slane %v2449_v47, %v3390_v46  ;;  %v2220_v47 = vcombine.high %v3835_v54, %v3850_v26  ;;  %v2204_v54 = vcombine.high %v3817_v27, %v3833_v3 }
 0x2a3   : > { %1198 = vrot.lane.b32.xlu0 %v1104_v39, %s3035_s19  ;;  %972 = vrot.lane.b32.xlu1 %v878_v13, %s3038_s26  ;;  %4888 = vst [vmem:[#allocation24_spill] sm:$0xff] %v4072_v33  ;;  %v4075_v13 = vrot.slane %v2433_v7, %v3390_v46  ;;  %v4098_v63 = vrot.slane %v2236_v12, %v3585_v50 }
 0x2a4   : > { %v2501_v26 = vcombine.low %v3848_v29, %v3857_v48  ;;  %v1823_v12 = vcombine.low %v3884_v52, %v3904_v28  ;;  %v1174_v27 = vcombine.high %v3946_v20, %v4882_v24  ;;  %v4118_v3 = vrot.slane %v2517_v16, %v3390_v46 }
 0x2a5   : > { %v4067_v44 = vpop.permute.xlu1 %751  ;;  %v4069_v19 = vpop.permute.xlu0 %755  ;;  %v2466_v7 = vcombine.high %v4075_v13, %v4063_v2  ;;  %v4132_v60 = vrot.slane %v2204_v54, %v3390_v46  ;;  %v1807_v20 = vcombine.low %v3866_v23, %v3882_v59 }
 0x2a6   : > { %4886 = vst [vmem:[#allocation22_spill] sm:$0xff] %v4067_v44  ;;  %4887 = vst [vmem:[#allocation23_spill] sm:$0xff] %v4069_v19  ;;  %v944_v19 = vcombine.high %v3928_v31, %v4882_v24  ;;  %v4091_v44 = vrot.slane %v1755_v43, %v3390_v46  ;;  %v4105_v31 = vrot.slane %v1739_v8, %v3390_v46 }
 0x2a7   : > { %1206 = vrot.lane.b32.xlu0 %v1173_v5, %s3037_s22  ;;  %2372 = vrot.lane.b32.xlu1 %v4072_v33, %s3032_s7  ;;  %v4111_v43 = vrot.slane %v2220_v47, %v3390_v46  ;;  %v2450_v8 = vcombine.high %v3925_v49, %v3943_v56  ;;  %v4129_v47 = vrot.slane %v2466_v7, %v3585_v50 }
 0x2a8   : > { %v4137_v16 = vrot.slane %v2501_v26, %v3390_v46  ;;  %v2434_v49 = vcombine.high %v3902_v25, %v3923_v9  ;;  %v2288_v56 = vcombine.high %v3803_v0, %v3819_v17  ;;  %v4149_v54 = vrot.slane %v1823_v12, %v3390_v46 }
 0x2a9   : > { %v4093_v36 = vpop.permute.xlu1 %2114  ;;  %v4095_v5 = vpop.permute.xlu0 %707  ;;  %v2251_v7 = vcombine.low %v4132_v60, %v4111_v43  ;;  %v1108_v26 = vcombine.high %v1104_v39, %v4882_v24  ;;  %v4155_v25 = vrot.slane %v2450_v8, %v3390_v46  ;;  %v1525_v9 = vcombine.low %v3997_v40, %v4007_v30 }
 0x2aa   : > { %4889 = vst [vmem:[#allocation25_spill] sm:$0xff] %v4095_v5  ;;  %v2272_v12 = vcombine.high %v3790_v4, %v3801_v35  ;;  %v4169_v39 = vrot.slane %v1807_v20, %v3390_v46  ;;  %v4172_v33 = vrot.slane %v2434_v49, %v3390_v46  ;;  %v1509_v8 = vcombine.low %v3987_v51, %v3995_v32 }
 0x2ab   : > { %984 = vrot.lane.b32.xlu0 %v944_v19, %s3034_s17  ;;  %2344 = vrot.lane.b32.xlu1 %v4098_v63, %s3032_s7  ;;  %v1772_v19 = vcombine.high %v4105_v31, %v4091_v44  ;;  %v2518_v4 = vcombine.high %v3859_v42, %v3868_v18  ;;  %v4187_v20 = vrot.slane %v2251_v7, %v3585_v50 }
 0x2ac   : > { %v1840_v35 = vcombine.high %v4169_v39, %v4149_v54  ;;  %v2481_v49 = vcombine.low %v4172_v33, %v4155_v25  ;;  %v4204_v18 = vrot.slane %v2272_v12, %v3390_v46  ;;  %v2502_v7 = vcombine.high %v3848_v29, %v3857_v48 }
 0x2ad   : > { %v4124_v5 = vpop.permute.xlu1 %1420  ;;  %v4126_v62 = vpop.permute.xlu0 %715  ;;  %v4164_v17 = vrot.slane %v1772_v19, %v3585_v50  ;;  %v4180_v19 = vrot.slane %v2288_v56, %v3390_v46  ;;  %4893 = vst [vmem:[#allocation29_spill] sm:$0xff] %v4187_v20 }
 0x2ae   : > { %4890 = vst [vmem:[#allocation26_spill] sm:$0xff] %v4126_v62  ;;  %v2534_v62 = vcombine.high %v4137_v16, %v4118_v3  ;;  %v4223_v29 = vrot.slane %v1840_v35, %v3585_v50  ;;  %v1754_v35 = vrot.slane %v1740_v38, %v3390_v46 }
 0x2af   : > { %1214 = vrot.lane.b32.xlu0 %v1174_v27, %s3034_s17  ;;  %2574 = vrot.lane.b32.xlu1 %v4129_v47, %s3032_s7  ;;  %4892 = vst [vmem:[#allocation28_spill] sm:$0xff] %v4164_v17 }
 0x2b0   : > { %v4201_v42 = vrot.slane %v2534_v62, %v3585_v50  ;;  %v2319_v62 = vcombine.low %v4204_v18, %v4180_v19  ;;  %4896 = vst [vmem:[#allocation32_spill] sm:$0xff] %v4223_v29 }
 0x2b1   : > { %v4159_v27 = vpop.permute.xlu1 %2122  ;;  %v4161_v0 = vpop.permute.xlu0 %723 }
 0x2b2   : > { %4891 = vst [vmem:[#allocation27_spill] sm:$0xff] %v4161_v0  ;;  %v4194_v0 = vrot.slane %v1525_v9, %v3390_v46  ;;  %4895 = vst [vmem:[#allocation31_spill] sm:$0xff] %v4201_v42 }
 0x2b3   : > { %1202 = vrot.lane.b32.xlu0 %v1108_v26, %s3038_s26  ;;  %1880 = vrot.lane.b32.xlu1 %v4164_v17, %s3032_s7  ;;  %v1756_v26 = vcombine.high %v3961_v21, %v3972_v22  ;;  %v4211_v21 = vrot.slane %v1509_v8, %v3390_v46  ;;  %v4220_v22 = vrot.slane %v2518_v4, %v3390_v46 }
 0x2b4   : > { %v4237_v8 = vrot.slane %v2481_v49, %v3585_v50  ;;  %v4240_v4 = vrot.slane %v2502_v7, %v3390_v46  ;;  %v1824_v49 = vcombine.high %v3884_v52, %v3904_v28  ;;  %v4254_v7 = vrot.slane %v2319_v62, %v3585_v50 }
 0x2b5   : > { %v4196_v56 = vpop.permute.xlu1 %1428  ;;  %v4198_v14 = vpop.permute.xlu0 %735  ;;  %v4226_v48 = vrot.slane %v1756_v26, %v3390_v46  ;;  %v1542_v10 = vcombine.high %v4211_v21, %v4194_v0  ;;  %v1577_v26 = vcombine.low %v3970_v53, %v3979_v11  ;;  %v1808_v52 = vcombine.high %v3866_v23, %v3882_v59 }
 0x2b6   : > { %4894 = vst [vmem:[#allocation30_spill] sm:$0xff] %v4198_v14  ;;  %4897 = vst [vmem:[#allocation33_spill] sm:$0xff] %v4237_v8  ;;  %v2549_v14 = vcombine.low %v4240_v4, %v4220_v22  ;;  %v1510_v62 = vcombine.high %v3987_v51, %v3995_v32  ;;  %v4286_v23 = vrot.slane %v1824_v49, %v3390_v46 }
 0x2b7   : > { %2602 = vrot.lane.b32.xlu0 %v4201_v42, %s3032_s7  ;;  %2352 = vrot.lane.b32.xlu1 %v4187_v20, %s3033_s8  ;;  %4898 = vst [vmem:[#allocation34_spill] sm:$0xff] %v4254_v7  ;;  %v1787_v38 = vcombine.low %v1754_v35, %v4226_v48  ;;  %v4258_v42 = vrot.slane %v1593_v6, %v3390_v46 }
 0x2b8   : > { %v4267_v17 = vrot.slane %v1542_v10, %v3585_v50  ;;  %v4272_v28 = vrot.slane %v1577_v26, %v3390_v46 }
 0x2b9   : > { %v4232_v9 = vpop.permute.xlu1 %2130  ;;  %v4234_v12 = vpop.permute.xlu0 %2142  ;;  %v4298_v10 = vrot.slane %v1787_v38, %v3585_v50 }
 0x2ba   : > { %v1610_v59 = vcombine.high %v4272_v28, %v4258_v42 }
 0x2bb   : > { %1908 = vrot.lane.b32.xlu0 %v4223_v29, %s3032_s7  ;;  %2582 = vrot.lane.b32.xlu1 %v4237_v8, %s3033_s8  ;;  %v1526_v29 = vcombine.high %v3997_v40, %v4007_v30  ;;  %v2252_v40 = vcombine.high %v4132_v60, %v4111_v43  ;;  %v4283_v30 = vrot.slane %v2549_v14, %v3585_v50 }
 0x2bc   : > { %4900 = vst [vmem:[#allocation36_spill] sm:$0xff] %v4298_v10  ;;  %v1822_v60 = vrot.slane %v1808_v52, %v3390_v46  ;;  %v4302_v14 = vrot.slane %v1510_v62, %v3390_v46  ;;  %v4314_v38 = vrot.slane %v1610_v59, %v3585_v50  ;;  %v2303_v62 = vcombine.low %v4029_v57, %v4019_v58 }
 0x2bd   : > { %v4262_v20 = vpop.permute.xlu1 %2110  ;;  %v4264_v8 = vpop.permute.xlu0 %1448  ;;  %4899 = vst [vmem:[#allocation35_spill] sm:$0xff] %v4283_v30  ;;  %v4291_v32 = vrot.slane %v1526_v29, %v3390_v46  ;;  %v4317_v52 = vrot.slane %v2252_v40, %v3585_v50  ;;  %v1594_v59 = vcombine.high %v3981_v45, %v3989_v61  ;;  %v1578_v58 = vcombine.high %v3970_v53, %v3979_v11 }
 0x2be   : > { %v1855_v43 = vcombine.low %v1822_v60, %v4286_v23  ;;  %4901 = vst [vmem:[#allocation37_spill] sm:$0xff] %v4314_v38  ;;  %v1839_v45 = vcombine.low %v4169_v39, %v4149_v54  ;;  %v2550_v57 = vcombine.high %v4240_v4, %v4220_v22  ;;  %v4360_v11 = vrot.slane %v2303_v62, %v3585_v50 }
 0x2bf   : > { %2380 = vrot.lane.b32.xlu0 %v4254_v7, %s3033_s8  ;;  %1650 = vrot.lane.b32.xlu1 %v4267_v17, %s3032_s7  ;;  %v1557_v29 = vcombine.low %v4302_v14, %v4291_v32  ;;  %4902 = vst [vmem:[#allocation38_spill] sm:$0xff] %v4317_v52  ;;  %v1788_v7 = vcombine.high %v1754_v35, %v4226_v48 }
 0x2c0   : > { %v1592_v35 = vrot.slane %v1578_v58, %v3390_v46  ;;  %v4368_v54 = vrot.slane %v1839_v45, %v3585_v50  ;;  %v2465_v39 = vcombine.low %v4075_v13, %v4063_v2  ;;  %v1856_v2 = vcombine.high %v1822_v60, %v4286_v23 }
 0x2c1   : > { %v4293_v51 = vpop.permute.xlu1 %1444  ;;  %v4295_v6 = vpop.permute.xlu0 %2150  ;;  %v4357_v53 = vrot.slane %v1788_v7, %v3585_v50 }
 0x2c2   : > { %v1871_v13 = vcombine.high %v4368_v54, %v4882_v24  ;;  %v4395_v58 = vrot.slane %v2465_v39, %v3585_v50 }
 0x2c3   : > { %2610 = vrot.lane.b32.xlu0 %v4283_v30, %s3033_s8  ;;  %1888 = vrot.lane.b32.xlu1 %v4298_v10, %s3033_s8  ;;  %v2320_v30 = vcombine.high %v4204_v18, %v4180_v19  ;;  %v1608_v19 = vrot.slane %v1594_v59, %v3390_v46  ;;  %v2335_v46 = vcombine.high %v4360_v11, %v4882_v24 }
 0x2c5   : > { %v1417_v26 = vpop.permute.xlu1 %1416  ;;  %v4311_v49 = vpop.permute.xlu0 %1456  ;;  %v4349_v61 = vrot.slane %v2320_v30, %v3585_v50  ;;  %v1625_v22 = vcombine.low %v1592_v35, %v1608_v19  ;;  %v4375_v30 = vrot.slane %v2550_v57, %v3585_v50  ;;  %v2497_v57 = vcombine.high %v4395_v58, %v4882_v24 }
 0x2c7   : > { %1678 = vrot.lane.b32.xlu0 %v4314_v38, %s3032_s7  ;;  %2360 = vrot.lane.b32.xlu1 %v4317_v52, %s3035_s19  ;;  %v4335_v38 = vrot.slane %v1855_v43, %v3585_v50  ;;  %v4338_v52 = vrot.slane %v1557_v29, %v3585_v50  ;;  %v1471_v43 = vsel %vm762_vm5, %v3756_v37, %v1417_v26  ;;  %s2775_s7 = scalar_lea.hbm %s4840_s3, %s2865_s10 }
 0x2c8   : > { %v1771_v29 = vcombine.low %v4105_v31, %v4091_v44  ;;  %v1472_v62 = vsel %vm764_vm6, %v1471_v43, %v4124_v5  ;;  %v4392_v26 = vrot.slane %v1625_v22, %v3585_v50  ;;  %v4402_v44 = vrot.slane %v1856_v2, %v3585_v50 }
 0x2c9   : > { %v4330_v10 = vpop.permute.xlu1 %2118  ;;  %v4332_v40 = vpop.permute.xlu0 %2158  ;;  %v2482_v5 = vcombine.high %v4172_v33, %v4155_v25  ;;  %v1626_v33 = vcombine.high %v1592_v35, %v1608_v19 }
 0x2cb   : > { %1916 = vrot.lane.b32.xlu0 %v4335_v38, %s3033_s8  ;;  %1658 = vrot.lane.b32.xlu1 %v4338_v52, %s3033_s8  ;;  %v4423_v2 = vrot.slane %v2482_v5, %v3585_v50 }
 0x2cd   : > { %v1425_v18 = vpop.permute.xlu1 %1424  ;;  %v4354_v48 = vpop.permute.xlu0 %1464 }
 0x2ce   : > { %v1473_v23 = vsel %vm766_vm7, %v1472_v62, %v1425_v18  ;;  %v4411_v18 = vrot.slane %v1771_v29, %v3585_v50  ;;  %v2268_v29 = vcombine.high %v4098_v63, %v4882_v24 }
 0x2cf   : > { %2388 = vrot.lane.b32.xlu0 %v4349_v61, %s3035_s19  ;;  %1896 = vrot.lane.b32.xlu1 %v4357_v53, %s3035_s19  ;;  %v1474_v31 = vsel %vm768_vm8, %v1473_v23, %v4196_v56 }
 0x2d1   : > { %v4372_v4 = vpop.permute.xlu1 %2126  ;;  %v1437_v7 = vpop.permute.xlu0 %1436 }
 0x2d3   : > { %2618 = vrot.lane.b32.xlu0 %v4375_v30, %s3035_s19  ;;  %2368 = vrot.lane.b32.xlu1 %v2335_v46, %s3037_s22 }
 0x2d5   : > { %v1433_v59 = vpop.permute.xlu1 %1432  ;;  %v2139_v37 = vpop.permute.xlu0 %2138 }
 0x2d6   : > { %v1475_v39 = vsel %vm770_vm9, %v1474_v31, %v1433_v59  ;;  %v2172_v22 = vsel %vm762_vm5, %v3810_v1, %v2139_v37  ;;  %v1803_v1 = vcombine.high %v4411_v18, %v4882_v24 }
 0x2d7   : > { %1686 = vrot.lane.b32.xlu0 %v4392_v26, %s3033_s8  ;;  %1904 = vrot.lane.b32.xlu1 %v1871_v13, %s3037_s22  ;;  %v2173_v25 = vsel %vm764_vm6, %v2172_v22, %v4234_v12  ;;  %v1476_v46 = vsel %vm772_vm11, %v1475_v39, %v1437_v7  ;;  %v1478_v13 = vsel %vm762_vm5, %v3738_v41, %v4293_v51  ;;  %s2763_s8 = scalar_lea.sflag [#allocation4], %s3158_s5 }
 0x2d8   : > { %v2235_v12 = vcombine.low %v4052_v15, %v4042_v34  ;;  %v4440_v7 = vrot.slane %v1626_v33, %v3585_v50  ;;  %v1541_v41 = vcombine.low %v4211_v21, %v4194_v0  ;;  %v1558_v51 = vcombine.high %v4302_v14, %v4291_v32 }
 0x2d9   : > { %v1469_v60 = vpop.permute.xlu1 %1468  ;;  %v2147_v45 = vpop.permute.xlu0 %2146  ;;  %v1479_v62 = vsel %vm764_vm6, %v1478_v13, %v4264_v8  ;;  %v2165_v15 = vsel %vm762_vm5, %v3707_v55, %v4262_v20  ;;  %v2533_v0 = vcombine.low %v4137_v16, %v4118_v3  ;;  %v2498_v21 = vcombine.high %v4129_v47, %v4882_v24 }
 0x2da   : > { %v2174_v19 = vsel %vm766_vm7, %v2173_v25, %v2147_v45  ;;  %v4465_v8 = vrot.slane %v2235_v12, %v3585_v50  ;;  %v2166_v55 = vsel %vm764_vm6, %v2165_v15, %v4093_v36  ;;  %v4472_v14 = vrot.slane %v1558_v51, %v3585_v50  ;;  %v4903_v25 = vld [vmem:[#allocation28_spill] sm:$0xff]  ;;  %v4906_v51 = vld [vmem:[#allocation29_spill] sm:$0xff]  ;;  %v4908_v15 = vld [vmem:[#allocation15_spill] sm:$0xff] }
 0x2db   : > { %1924 = vrot.lane.b32.xlu0 %v4402_v44, %s3035_s19  ;;  %2570 = vrot.lane.b32.xlu1 %v2497_v57, %s3037_s22  ;;  %v2175_v37 = vsel %vm768_vm8, %v2174_v19, %v4295_v6  ;;  %v4475_v5 = vrot.slane %v1541_v41, %v3585_v50  ;;  %v2167_v3 = vsel %vm766_vm7, %v2166_v55, %v4330_v10  ;;  %v4905_v19 = vld [vmem:[#allocation13_spill] sm:$0xff]  ;;  %v4910_v55 = vld [vmem:[#allocation31_spill] sm:$0xff] }
 0x2dc   : > { %v2168_v31 = vsel %vm768_vm8, %v2167_v3, %v4159_v27  ;;  %v4497_v39 = vrot.slane %v2533_v0, %v3585_v50  ;;  %v4909_v0 = vld [vmem:[#allocation33_spill] sm:$0xff] }
 0x2dd   : > { %v1441_v56 = vpop.permute.xlu1 %1440  ;;  %v1453_v43 = vpop.permute.xlu0 %1452 }
 0x2de   : > { %v4432_v35 = vsel %vm774_vm10, %v1476_v46, %v1441_v56  ;;  %v1480_v63 = vsel %vm766_vm7, %v1479_v62, %v1453_v43  ;;  %v1804_v56 = vcombine.high %v4903_v25, %v4882_v24  ;;  %v2565_v46 = vcombine.high %v4497_v39, %v4882_v24  ;;  %v4904_v43 = vld [vmem:[#allocation14_spill] sm:$0xff] }
 0x2df   : > { %2590 = vrot.lane.b32.xlu0 %v4423_v2, %s3035_s19  ;;  %1876 = vrot.lane.b32.xlu1 %v1803_v1, %s3037_s22  ;;  %v1481_v32 = vsel %vm768_vm8, %v1480_v63, %v4311_v49  ;;  %v2267_v49 = vcombine.high %v4465_v8, %v4882_v24  ;;  %v2269_v62 = vcombine.high %v4906_v51, %v4882_v24 }
 0x2e1   : > { %v953_v59 = vpop.permute.xlu1 %952  ;;  %v2155_v34 = vpop.permute.xlu0 %2154 }
 0x2e2   : > { %v2176_v23 = vsel %vm770_vm9, %v2175_v37, %v2155_v34  ;;  %v4907_v37 = vld [vmem:[#allocation24_spill] sm:$0xff] }
 0x2e3   : > { %1694 = vrot.lane.b32.xlu0 %v4440_v7, %s3035_s19  ;;  %2348 = vrot.lane.b32.xlu1 %v2268_v29, %s3034_s17  ;;  %v2177_v45 = vsel %vm772_vm11, %v2176_v23, %v4332_v40  ;;  %v2336_v34 = vcombine.high %v4907_v37, %v4882_v24  ;;  %v2500_v37 = vcombine.high %v4423_v2, %v4882_v24 }
 0x2e5   : > { %v1183_v20 = vpop.permute.xlu1 %1182  ;;  %v1461_v6 = vpop.permute.xlu0 %1460 }
 0x2e6   : > { %v1482_v47 = vsel %vm770_vm9, %v1481_v32, %v1461_v6  ;;  %v2566_v32 = vcombine.high %v4910_v55, %v4882_v24  ;;  %v1806_v55 = vcombine.high %v4357_v53, %v4882_v24 }
 0x2e7   : > { %v1483_v16 = vsel %vm772_vm11, %v1482_v47, %v4354_v48  ;;  %1666 = vrot.lane.b32.xlu0 %v4472_v14, %s3035_s19  ;;  %2578 = vrot.lane.b32.xlu1 %v2498_v21, %s3034_s17  ;;  %v1573_v48 = vcombine.high %v4475_v5, %v4882_v24  ;;  %v2499_v21 = vcombine.high %v4909_v0, %v4882_v24 }
 0x2e8   : > { %v4486_v36 = vsel %vm774_vm10, %v1483_v16, %v1469_v60  ;;  %v2169_v60 = vsel %vm770_vm9, %v2168_v31, %v4372_v4  ;;  %v1574_v16 = vcombine.high %v4267_v17, %v4882_v24  ;;  %v1873_v0 = vcombine.high %v4335_v38, %v4882_v24 }
 0x2e9   : > { %v977_v10 = vpop.permute.xlu1 %976  ;;  %v2163_v57 = vpop.permute.xlu0 %2162  ;;  %v2170_v40 = vsel %vm772_vm11, %v2169_v60, %v4232_v9  ;;  %v1609_v9 = vcombine.low %v4272_v28, %v4258_v42  ;;  %v4912_v60 = vld [vmem:[#allocation32_spill] sm:$0xff] }
 0x2ea   : > { %v4502_v22 = vsel %vm774_vm10, %v2177_v45, %v2163_v57  ;;  %v1010_v12 = vsel %vm762_vm5, %v4905_v19, %v977_v10  ;;  %v4911_v57 = vld [vmem:[#allocation36_spill] sm:$0xff]  ;;  %v4915_v19 = vld [vmem:[#allocation35_spill] sm:$0xff] }
 0x2eb   : > { %2340 = vrot.lane.b32.xlu0 %v2267_v49, %s3037_s22  ;;  %1646 = vrot.lane.b32.xlu1 %v1573_v48, %s3037_s22  ;;  %v4543_v6 = vrot.slane %v1609_v9, %v3585_v50  ;;  %v1805_v48 = vcombine.high %v4911_v57, %v4882_v24  ;;  %v2568_v9 = vcombine.high %v4375_v30, %v4882_v24  ;;  %v4917_v57 = vld [vmem:[#allocation8_spill] sm:$0xff] }
 0x2ed   : > { %v949_v27 = vpop.permute.xlu1 %948  ;;  %v2135_v33 = vpop.permute.xlu0 %2134  ;;  %v1641_v49 = vcombine.high %v4543_v6, %v4882_v24 }
 0x2ee   : > { %v1003_v4 = vsel %vm762_vm5, %v4904_v43, %v949_v27  ;;  %v4515_v1 = vsel %vm774_vm10, %v2170_v40, %v2135_v33  ;;  %v1872_v27 = vcombine.high %v4912_v60, %v4882_v24  ;;  %v4913_v33 = vld [vmem:[#allocation38_spill] sm:$0xff] }
 0x2ef   : > { %1884 = vrot.lane.b32.xlu1 %v1804_v56, %s3034_s17  ;;  %2598 = vrot.lane.b32.xlu0 %v2565_v46, %s3037_s22  ;;  %v1004_v13 = vsel %vm764_vm6, %v1003_v4, %v953_v59  ;;  %v2270_v25 = vcombine.high %v4913_v33, %v4882_v24  ;;  %v4914_v56 = vld [vmem:[#allocation34_spill] sm:$0xff] }
 0x2f0   : > { %v2337_v46 = vcombine.high %v4914_v56, %v4882_v24 }
 0x2f1   : > { %v1179_v29 = vpop.permute.xlu1 %1178  ;;  %v981_v41 = vpop.permute.xlu0 %980 }
 0x2f2   : > { %v1233_v63 = vsel %vm762_vm5, %v4908_v15, %v1179_v29  ;;  %v4531_v23 = vsel %vm764_vm6, %v1010_v12, %v981_v41  ;;  %v2567_v12 = vcombine.high %v4915_v19, %v4882_v24 }
 0x2f3   : > { %2356 = vrot.lane.b32.xlu1 %v2269_v62, %s3036_s20  ;;  %2376 = vrot.lane.b32.xlu0 %v2336_v34, %s3034_s17  ;;  %v1234_v42 = vsel %vm764_vm6, %v1233_v63, %v1183_v20  ;;  %v4916_v34 = vld [vmem:[#allocation37_spill] sm:$0xff] }
 0x2f4   : > { %v1642_v15 = vcombine.high %v4916_v34, %v4882_v24  ;;  %v2648_v34 = vrot.slane %v4486_v36, 4 }
 0x2f5   : > { %v957_v28 = vpop.permute.xlu1 %956  ;;  %v4536_v59 = vpop.permute.xlu0 %1210 }
 0x2f6   : > { %v1005_v3 = vsel %vm766_vm7, %v1004_v13, %v957_v28  ;;  %v1575_v28 = vcombine.high %v4338_v52, %v4882_v24 }
 0x2f7   : > { %2586 = vrot.lane.b32.xlu1 %v2499_v21, %s3036_s20  ;;  %2606 = vrot.lane.b32.xlu0 %v2566_v32, %s3034_s17  ;;  %v2338_v32 = vcombine.high %v4349_v61, %v4882_v24 }
 0x2f9   : > { %v1187_v47 = vpop.permute.xlu1 %1186  ;;  %v4548_v20 = vpop.permute.xlu0 %988 }
 0x2fa   : > { %v1235_v31 = vsel %vm766_vm7, %v1234_v42, %v1187_v47  ;;  %v1644_v47 = vcombine.high %v4440_v7, %v4882_v24 }
 0x2fb   : > { %1654 = vrot.lane.b32.xlu1 %v1574_v16, %s3034_s17  ;;  %1674 = vrot.lane.b32.xlu0 %v1641_v49, %s3037_s22  ;;  %v1643_v16 = vcombine.high %v4392_v26, %v4882_v24  ;;  %v1874_v26 = vcombine.high %v4402_v44, %v4882_v24  ;;  %v1576_v44 = vcombine.high %v4472_v14, %v4882_v24 }
 0x2fd   : > { %v4557_v10 = vpop.permute.xlu1 %992  ;;  %v4559_v45 = vpop.permute.xlu0 %1218 }
 0x2ff   : > { %1892 = vrot.lane.b32.xlu1 %v1805_v48, %s3036_s20  ;;  %1912 = vrot.lane.b32.xlu0 %v1872_v27, %s3034_s17  ;;  %v4918_v48 = vld [vmem:[#allocation9_spill] sm:$0xff]  ;;  %v4920_v27 = vld [vmem:[#allocation19_spill] sm:$0xff] }
 0x300   : > { %v4919_v60 = vcombine.high %v4917_v57, %v4918_v48 }
 0x301   : > { %v4567_v17 = vpop.permute.xlu1 %1222  ;;  %v961_v40 = vpop.permute.xlu0 %960 }
 0x302   : > { %v1006_v43 = vsel %vm768_vm8, %v1005_v3, %v961_v40  ;;  %v633_v7 = vrot.slane %v4919_v60, %v3585_v50 }
 0x303   : > { %2364 = vrot.lane.b32.xlu1 %v2270_v25, %s3038_s26  ;;  %2384 = vrot.lane.b32.xlu0 %v2337_v46, %s3036_s20  ;;  %v3039_v25 = vmov 0  }
 0x304   : > { %2928 = vset.pattern.permute.xlu0 %v3039_v25  ;;  %v637_v50 = vcombine.high %v633_v7, %v4882_v24 }
 0x305   : > { %v965_v4 = vpop.permute.xlu1 %964  ;;  %v1191_v13 = vpop.permute.xlu0 %1190 }
 0x306   : > { %v1007_v29 = vsel %vm770_vm9, %v1006_v43, %v965_v4  ;;  %v1236_v41 = vsel %vm768_vm8, %v1235_v31, %v1191_v13  ;;  %v4921_v13 = vld [vmem:[#allocation11_spill] sm:$0xff] }
 0x307   : > { %2622 = vrot.lane.b32.xlu1 %v2568_v9, %s3038_s26  ;;  %2614 = vrot.lane.b32.xlu0 %v2567_v12, %s3036_s20  ;;  %v705_v9 = vcombine.high %v4921_v13, %v4882_v24  ;;  %v2673_v24 = vld [vmem:[%s4839_s2] sm:$0xff] }
 0x309   : > { %v1195_v51 = vpop.permute.xlu1 %1194  ;;  %v997_v62 = vpop.permute.xlu0 %996 }
 0x30a   : > { %v1237_v30 = vsel %vm770_vm9, %v1236_v41, %v1195_v51  ;;  %v2647_v41 = vrot.slane %v4432_v35, 4 }
 0x30b   : > { %2594 = vrot.lane.b32.xlu1 %v2500_v37, %s3038_s26  ;;  %1682 = vrot.lane.b32.xlu0 %v1642_v15, %s3034_s17  ;;  %s2957_s17 = scalar_lea.vmem %s2778_s4, 256 }
 0x30c   : > { %p2958_p11 = scmp.ne.s32.totalorder %s2778_s4, %s2957_s17 }
 0x30d   : > { %v1001_v63 = vpop.permute.xlu1 %1000  ;;  %v1227_v42 = vpop.permute.xlu0 %1226 }
 0x30e   : > { %p2959_p13 = pnand %p2958_p11, %p4935_p12 }
 0x30f   : > { %1662 = vrot.lane.b32.xlu1 %v1575_v28, %s3036_s20  ;;  %1920 = vrot.lane.b32.xlu0 %v1873_v0, %s3036_s20 }
 0x310   : > { %p2960_p4 = pneg %p2959_p13 }
 0x311   : > { %v1231_v2 = vpop.permute.xlu1 %1230  ;;  %v969_v21 = vpop.permute.xlu0 %968 }
 0x312   : > { %v1008_v3 = vsel %vm772_vm11, %v1007_v29, %v969_v21 }
 0x313   : > { %1900 = vrot.lane.b32.xlu1 %v1806_v55, %s3038_s26  ;;  %2392 = vrot.lane.b32.xlu0 %v2338_v32, %s3038_s26 }
 0x315   : > { %v973_v52 = vpop.permute.xlu1 %972  ;;  %v1199_v38 = vpop.permute.xlu0 %1198 }
 0x316   : > { %v4609_v49 = vsel %vm774_vm10, %v1008_v3, %v973_v52  ;;  %v1238_v53 = vsel %vm772_vm11, %v1237_v30, %v1199_v38 }
 0x317   : > { %1698 = vrot.lane.b32.xlu1 %v1644_v47, %s3038_s26  ;;  %1690 = vrot.lane.b32.xlu0 %v1643_v16, %s3036_s20 }
 0x319   : > { %v4614_v61 = vpop.permute.xlu1 %2372  ;;  %v1207_v31 = vpop.permute.xlu0 %1206 }
 0x31a   : > { %v1240_v40 = vsel %vm762_vm5, %v4920_v27, %v1207_v31 }
 0x31b   : > { %727 = vrot.lane.b32.xlu1 %v633_v7, %s3035_s19  ;;  %1928 = vrot.lane.b32.xlu0 %v1874_v26, %s3038_s26  ;;  %v1241_v33 = vsel %vm764_vm6, %v1240_v40, %v4536_v59  ;;  %s3040_s19 = smov [#allocation5]  }
 0x31c   : > { %s2961_s16 = sshll.u32 %s3040_s19, 4  ;;  %s2962_s16 = int_to_ptr.vmem [resolvable:$false] %s2961_s16 }
 0x31d   : > { %v4628_v56 = vpop.permute.xlu1 %2344  ;;  %v985_v46 = vpop.permute.xlu0 %984  ;;  %s2963_s20 = scalar_lea.vmem %s2962_s16, 512  ;;  %p2964_p5 = scmp.lt.s32.totalorder %s2778_s4, %s2962_s16 }
 0x31e   : > { %v1012_v43 = vsel %vm766_vm7, %v4531_v23, %v985_v46  ;;  %p2965_p7 = scmp.lt.s32.totalorder %s2963_s20, %s2957_s17 }
 0x31f   : > { %v1013_v4 = vsel %vm768_vm8, %v1012_v43, %v4548_v20  ;;  %731 = vrot.lane.b32.xlu1 %v637_v50, %s3038_s26  ;;  %1670 = vrot.lane.b32.xlu0 %v1576_v44, %s3038_s26 }
 0x320   : > { %v1014_v59 = vsel %vm770_vm9, %v1013_v4, %v4557_v10  ;;  %p2966_p8 = por %p2965_p7, %p2964_p5 }
 0x321   : > { %v1015_v19 = vsel %vm772_vm11, %v1014_v59, %v997_v62  ;;  %v2575_v12 = vpop.permute.xlu1 %2574  ;;  %v1215_v14 = vpop.permute.xlu0 %1214 }
 0x322   : > { %v1242_v29 = vsel %vm766_vm7, %v1241_v33, %v1215_v14  ;;  %v4646_v23 = vsel %vm774_vm10, %v1015_v19, %v1001_v63  ;;  %p2967_p10 = pnand %p2966_p8, %p2960_p4 }
 0x323   : > { %v1243_v20 = vsel %vm768_vm8, %v1242_v29, %v4559_v45  ;;  %759 = vrot.lane.b32.xlu0 %v705_v9, %s3038_s26 }
 0x324   : > { %v1244_v10 = vsel %vm770_vm9, %v1243_v20, %v4567_v17 }
 0x325   : > { %v1881_v51 = vpop.permute.xlu1 %1880  ;;  %v1203_v62 = vpop.permute.xlu0 %1202  ;;  %v1245_v37 = vsel %vm772_vm11, %v1244_v10, %v1227_v42 }
 0x326   : > { %v1239_v45 = vsel %vm774_vm10, %v1238_v53, %v1203_v62  ;;  %v1246_v15 = vsel %vm774_vm10, %v1245_v37, %v1231_v2 }
 0x327   : > { %v4662_v30 = vsel %vm2663_vm12, %v1246_v15, %v2648_v34  ;;  %v4665_v17 = vsel %vm2663_vm12, %v1239_v45, %v2647_v41  ;;  %2676 = vperm.xlu0 %2928, %v2673_v24  }
 0x329   : > { %v2353_v63 = vpop.permute.xlu1 %2352  ;;  %v2603_v28 = vpop.permute.xlu0 %2602 }
 0x32d   : > { %v2583_v35 = vpop.permute.xlu1 %2582  ;;  %v1909_v0 = vpop.permute.xlu0 %1908 }
 0x331   : > { %v1651_v21 = vpop.permute.xlu1 %1650  ;;  %v2381_v55 = vpop.permute.xlu0 %2380 }
 0x335   : > { %v1889_v42 = vpop.permute.xlu1 %1888  ;;  %v2611_v32 = vpop.permute.xlu0 %2610 }
 0x339   : > { %v2361_v36 = vpop.permute.xlu1 %2360  ;;  %v4667_v3 = vpop.permute.xlu0 %1678 }
 0x33d   : > { %v1659_v52 = vpop.permute.xlu1 %1658  ;;  %v1917_v2 = vpop.permute.xlu0 %1916 }
 0x341   : > { %v1897_v38 = vpop.permute.xlu1 %1896  ;;  %v4669_v47 = vpop.permute.xlu0 %2388 }
 0x345   : > { %v2369_v16 = vpop.permute.xlu1 %2368  ;;  %v4671_v53 = vpop.permute.xlu0 %2618 }
 0x346   : > { %v2402_v10 = vsel %vm762_vm5, %v4360_v11, %v2369_v16 }
 0x349   : > { %v1905_v31 = vpop.permute.xlu1 %1904  ;;  %v4673_v57 = vpop.permute.xlu0 %1686 }
 0x34d   : > { %v2571_v48 = vpop.permute.xlu1 %2570  ;;  %v4675_v60 = vpop.permute.xlu0 %1924 }
 0x34e   : > { %v2625_v33 = vsel %vm762_vm5, %v4395_v58, %v2571_v48 }
 0x34f   : > { %v2626_v25 = vsel %vm764_vm6, %v2625_v33, %v2575_v12 }
 0x351   : > { %v1877_v7 = vpop.permute.xlu1 %1876  ;;  %v4677_v26 = vpop.permute.xlu0 %2590 }
 0x352   : > { %v1931_v13 = vsel %vm762_vm5, %v4411_v18, %v1877_v7 }
 0x353   : > { %v1932_v12 = vsel %vm764_vm6, %v1931_v13, %v1881_v51 }
 0x355   : > { %v2349_v27 = vpop.permute.xlu1 %2348  ;;  %v4679_v40 = vpop.permute.xlu0 %1694 }
 0x359   : > { %v2579_v46 = vpop.permute.xlu1 %2578  ;;  %v4684_v50 = vpop.permute.xlu0 %1666 }
 0x35a   : > { %v2627_v44 = vsel %vm766_vm7, %v2626_v25, %v2579_v46 }
 0x35b   : > { %v2628_v43 = vsel %vm768_vm8, %v2627_v44, %v2583_v35 }
 0x35d   : > { %v1647_v4 = vpop.permute.xlu1 %1646  ;;  %v2341_v59 = vpop.permute.xlu0 %2340 }
 0x35e   : > { %v2395_v9 = vsel %vm762_vm5, %v4465_v8, %v2341_v59  ;;  %v2403_v8 = vsel %vm764_vm6, %v2402_v10, %v4614_v61  ;;  %v1701_v35 = vsel %vm762_vm5, %v4475_v5, %v1647_v4 }
 0x35f   : > { %v2396_v58 = vsel %vm764_vm6, %v2395_v9, %v4628_v56 }
 0x360   : > { %v2397_v19 = vsel %vm766_vm7, %v2396_v58, %v2349_v27 }
 0x361   : > { %v1885_v14 = vpop.permute.xlu1 %1884  ;;  %v2599_v29 = vpop.permute.xlu0 %2598  ;;  %v2398_v20 = vsel %vm768_vm8, %v2397_v19, %v2353_v63 }
 0x362   : > { %v1933_v24 = vsel %vm766_vm7, %v1932_v12, %v1885_v14  ;;  %v2632_v62 = vsel %vm762_vm5, %v4497_v39, %v2599_v29  ;;  %v1702_v39 = vsel %vm764_vm6, %v1701_v35, %v1651_v21  ;;  %v4927_v35 = vld [vmem:[#allocation20_spill] sm:$0xff] }
 0x363   : > { %v1934_v18 = vsel %vm768_vm8, %v1933_v24, %v1889_v42  ;;  %v2633_v15 = vsel %vm764_vm6, %v2632_v62, %v2603_v28 }
 0x365   : > { %v2357_v41 = vpop.permute.xlu1 %2356  ;;  %v2377_v56 = vpop.permute.xlu0 %2376 }
 0x366   : > { %v2399_v51 = vsel %vm770_vm9, %v2398_v20, %v2357_v41  ;;  %v2404_v37 = vsel %vm766_vm7, %v2403_v8, %v2377_v56  ;;  %v4923_v41 = vld [vmem:[#allocation12_spill] sm:$0xff]  ;;  %v4924_v56 = vld [vmem:[#allocation18_spill] sm:$0xff] }
 0x367   : > { %v2400_v34 = vsel %vm772_vm11, %v2399_v51, %v2361_v36  ;;  %v2405_v11 = vsel %vm768_vm8, %v2404_v37, %v2381_v55  ;;  %v1938_v36 = vsel %vm762_vm5, %v4368_v54, %v1905_v31 }
 0x368   : > { %v1939_v27 = vsel %vm764_vm6, %v1938_v36, %v1909_v0 }
 0x369   : > { %v2587_v45 = vpop.permute.xlu1 %2586  ;;  %v2607_v63 = vpop.permute.xlu0 %2606 }
 0x36a   : > { %v2634_v61 = vsel %vm766_vm7, %v2633_v15, %v2607_v63  ;;  %v2629_v9 = vsel %vm770_vm9, %v2628_v43, %v2587_v45  ;;  %v4925_v45 = vld [vmem:[#allocation25_spill] sm:$0xff]  ;;  %v4926_v15 = vld [vmem:[#allocation10_spill] sm:$0xff] }
 0x36b   : > { %v2635_v42 = vsel %vm768_vm8, %v2634_v61, %v2611_v32  ;;  %v763_v63 = vsel %vm762_vm5, %v4926_v15, %v4925_v45 }
 0x36d   : > { %v1655_v16 = vpop.permute.xlu1 %1654  ;;  %v1675_v48 = vpop.permute.xlu0 %1674 }
 0x36e   : > { %v1703_v55 = vsel %vm766_vm7, %v1702_v39, %v1655_v16 }
 0x36f   : > { %v1704_v7 = vsel %vm768_vm8, %v1703_v55, %v1659_v52 }
 0x371   : > { %v1893_v28 = vpop.permute.xlu1 %1892  ;;  %v1913_v33 = vpop.permute.xlu0 %1912 }
 0x372   : > { %v1935_v5 = vsel %vm770_vm9, %v1934_v18, %v1893_v28  ;;  %v1940_v25 = vsel %vm766_vm7, %v1939_v27, %v1913_v33  ;;  %v4922_v18 = vld [vmem:[#allocation30_spill] sm:$0xff] }
 0x373   : > { %v1941_v32 = vsel %vm768_vm8, %v1940_v25, %v1917_v2  ;;  %v1936_v21 = vsel %vm772_vm11, %v1935_v5, %v1897_v38  ;;  %v1708_v2 = vsel %vm762_vm5, %v4543_v6, %v1675_v48  ;;  %v4928_v48 = vld [vmem:[#allocation16_spill] sm:$0xff]  ;;  %v4929_v33 = vld [vmem:[#allocation26_spill] sm:$0xff] }
 0x374   : > { %v765_v36 = vsel %vm764_vm6, %v763_v63, %v4928_v48 }
 0x375   : > { %v2365_v46 = vpop.permute.xlu1 %2364  ;;  %v2385_v44 = vpop.permute.xlu0 %2384  ;;  %v767_v5 = vsel %vm766_vm7, %v765_v36, %v4929_v33 }
 0x376   : > { %v2401_v54 = vsel %vm774_vm10, %v2400_v34, %v2365_v46  ;;  %v2406_v31 = vsel %vm770_vm9, %v2405_v11, %v2385_v44 }
 0x377   : > { %v2659_v4 = vrot.slane %v2401_v54, 4  ;;  %v2407_v52 = vsel %vm772_vm11, %v2406_v31, %v4669_v47  ;;  %v1709_v47 = vsel %vm764_vm6, %v1708_v2, %v4667_v3  ;;  %v776_v3 = vsel %vm762_vm5, %v4923_v41, %v4922_v18  ;;  %v4931_v31 = vld [vmem:[#allocation17_spill] sm:$0xff] }
 0x378   : > { %v777_v62 = vsel %vm764_vm6, %v776_v3, %v4924_v56 }
 0x379   : > { %v2623_v0 = vpop.permute.xlu1 %2622  ;;  %v2615_v59 = vpop.permute.xlu0 %2614  ;;  %v2670_v13 = vsel %vm2663_vm12, %v4515_v1, %v2659_v4  ;;  %v2630_v1 = vsel %vm772_vm11, %v2629_v9, %v4677_v26  ;;  %v778_v61 = vsel %vm766_vm7, %v777_v62, %v4927_v35 }
 0x37a   : > { %v2636_v38 = vsel %vm770_vm9, %v2635_v42, %v2615_v59 }
 0x37b   : > { %v2637_v58 = vsel %vm772_vm11, %v2636_v38, %v4671_v53 }
 0x37c   : > { %v2638_v19 = vsel %vm774_vm10, %v2637_v58, %v2623_v0  ;;  %v4932_v0 = vld [vmem:[#allocation22_spill] sm:$0xff]  ;;  %v4934_v58 = vld [vmem:[#allocation23_spill] sm:$0xff] }
 0x37d   : > { %v2595_v12 = vpop.permute.xlu1 %2594  ;;  %2856 = vmatprep.subr.msk.mxu0 %vm2663_vm12, %v2638_v19  ;;  %v1683_v14 = vpop.permute.xlu0 %1682 }
 0x37e   : > { %v1710_v43 = vsel %vm766_vm7, %v1709_v47, %v1683_v14  ;;  %v2631_v6 = vsel %vm774_vm10, %v2630_v1, %v2595_v12  ;;  %v2642_v47 = vrot.slane %v4646_v23, 4  ;;  %v2641_v14 = vrot.slane %v4609_v49, 4 }
 0x37f   : > { %2857 = vmatpush1.msk.msra.mxu0 %vm2663_vm12, %v2631_v6  ;;  %v1711_v53 = vsel %vm768_vm8, %v1710_v43, %v4673_v57  ;;  %v2672_v6 = vld [vmem:[%s4838_s1] sm:$0xff] }
 0x381   : > { %v1663_v29 = vpop.permute.xlu1 %1662  ;;  %v1921_v20 = vpop.permute.xlu0 %1920 }
 0x382   : > { %v1942_v57 = vsel %vm770_vm9, %v1941_v32, %v1921_v20  ;;  %v1705_v55 = vsel %vm770_vm9, %v1704_v7, %v1663_v29  ;;  %v4930_v32 = vld [vmem:[#allocation21_spill] sm:$0xff] }
 0x383   : > { %v1706_v44 = vsel %vm772_vm11, %v1705_v55, %v4684_v50 }
 0x385   : > { %v1901_v10 = vpop.permute.xlu1 %1900  ;;  %v2393_v24 = vpop.permute.xlu0 %2392 }
 0x386   : > { %v2408_v8 = vsel %vm774_vm10, %v2407_v52, %v2393_v24  ;;  %v1937_v28 = vsel %vm774_vm10, %v1936_v21, %v1901_v10  ;;  %v769_v21 = vsel %vm768_vm8, %v767_v5, %v4931_v31 }
 0x387   : > { %v2660_v26 = vrot.slane %v2408_v8, 4 }
 0x389   : > { %v1699_v51 = vpop.permute.xlu1 %1698  ;;  %v1691_v37 = vpop.permute.xlu0 %1690  ;;  %v2671_v34 = vsel %vm2663_vm12, %v4502_v22, %v2660_v26  ;;  %v1943_v22 = vsel %vm772_vm11, %v1942_v57, %v4675_v60  ;;  %v2653_v60 = vrot.slane %v1937_v28, 4 }
 0x38a   : > { %v1712_v11 = vsel %vm770_vm9, %v1711_v53, %v1691_v37  ;;  %2713 = vmatprep.subr.mxu0 %v2671_v34 }
 0x38b   : > { %2714 = vmatpush1.msra.mxu0 %v2670_v13  ;;  %v1713_v42 = vsel %vm772_vm11, %v1712_v11, %v4679_v40  ;;  %v779_v40 = vsel %vm768_vm8, %v778_v61, %v4930_v32  ;;  %v4933_v13 = vld [vmem:[#allocation27_spill] sm:$0xff] }
 0x38c   : > { %v1714_v46 = vsel %vm774_vm10, %v1713_v42, %v1699_v51  ;;  %v780_v59 = vsel %vm770_vm9, %v779_v40, %v4932_v0  ;;  %v771_v9 = vsel %vm770_vm9, %v769_v21, %v4933_v13 }
 0x38d   : > { %v728_v39 = vpop.permute.xlu1 %727  ;;  %v1929_v16 = vpop.permute.xlu0 %1928  ;;  %v781_v19 = vsel %vm772_vm11, %v780_v59, %v4934_v58 }
 0x38e   : > { %v1944_v27 = vsel %vm774_vm10, %v1943_v22, %v1929_v16  ;;  %v773_v50 = vsel %vm772_vm11, %v771_v9, %v728_v39 }
 0x38f   : > { %v2654_v25 = vrot.slane %v1944_v27, 4 }
 0x391   : > { %v1671_v54 = vpop.permute.xlu0 %1670  ;;  %v2669_v7 = vsel %vm2663_vm12, %v1714_v46, %v2654_v25  ;;  %v732_v4 = vpop.permute.xlu1 %731 }
 0x392   : > { %v1707_v52 = vsel %vm774_vm10, %v1706_v44, %v1671_v54  ;;  %2715 = vmatprep.subr.mxu0 %v2669_v7  ;;  %v775_v38 = vsel %vm774_vm10, %v773_v50, %v732_v4 }
 0x393   : > { %v2668_v2 = vsel %vm2663_vm12, %v1707_v52, %v2653_v60 }
 0x394   : > { %2716 = vmatpush1.msra.mxu0 %v2668_v2 }
 0x395   : > { %2717 = vmatprep.subr.mxu0 %v4662_v30  ;;  %v760_v12 = vpop.permute.xlu0 %759  ;;  %v2664_v30 = vsel %vm2663_vm12, %v775_v38, %v2641_v14 }
 0x396   : > { %v782_v1 = vsel %vm774_vm10, %v781_v19, %v760_v12  ;;  %2718 = vmatpush1.msra.mxu0 %v4665_v17 }
 0x397   : > { %v2665_v43 = vsel %vm2663_vm12, %v782_v1, %v2642_v47 }
 0x398   : > { %2719 = vmatprep.subr.mxu0 %v2665_v43 }
 0x399   : > { %2720 = vmatpush1.msra.mxu0 %v2664_v30 }
 0x39a   : > { %2858 = vmatmul.mubr.msk.f32.vlgmr.msra.gmra.mxu0 %vm2679_vm13, %v2672_v6 }
 0x3a2   : > { %v2677_v49 = vpop.permute.xlu0 %2676 }
 0x45a   : > { %v2755_v23 = vpop.f32.mrf.mxu0 }
 0x45b   : > { %v2756_v17 = vadd.f32 %v2755_v23, %v2677_v49 }
 0x45c   : > { %v2757_v53 = vpop.f32.mrf.mxu0 }
 0x45d   : > { %2760 = vst [vmem:[%s188_s11] sm:$0xff] %v2756_v17  ;;  %v2758_v29 = vadd.f32 %v2757_v53, %v2677_v49 }
 0x45f   : > { %2761 = vst [vmem:[%s188_s11 + $0x8] sm:$0xff] %v2758_v29 }
 0x460   : > { %2970 = shalt.err (!%p2967_p10)
}
 0x461   : > { %s2971_s22 = scalar_lea.hbm %s2775_s7, 256  ;;  %s2975_s27 = scalar_lea.hbm %s4840_s3, 512 }
 0x462   : > { %p2972_p0 = scmp.ne.s32.totalorder %s2775_s7, %s2971_s22  ;;  %p2976_p1 = scmp.lt.s32.totalorder %s2775_s7, %s4840_s3 }
 0x463   : > { %p2977_p3 = scmp.lt.s32.totalorder %s2975_s27, %s2971_s22 }
 0x464   : > { %p2973_p2 = pnand %p2972_p0, %p4935_p12 }
 0x465   : > { %p2978_p6 = por %p2977_p3, %p2976_p1 }
 0x466   : > { %p2974_p9 = pneg %p2973_p2 }
 0x468   : > { %p2979_p11 = pnand %p2978_p6, %p2974_p9 }
 0x46a   : > { %2982 = shalt.err (!%p2979_p11)
}
 0x46b   : > { %2868 = dma.vmem_to_hbm [thread:$0]  (%p4935_p12), %s2778_s4, 256, %s2775_s7, %s2763_s8  }
 0x46c PF: > { %s2789_s30 = sand.u32 1, %s3009_s12   ;;  %p4936_p13 = scmp.ne.s32.totalorder %s4868_s25, 0 }
 0x46d   : > { %p4937_p4 = scmp.ge.s32.totalorder %s3021_s15, 2  ;;  %s2790_s9 = scalar_lea.sflag [#allocation4], %s2789_s30 }
 0x46f   : > { %p2875_p5 = pnand %p4937_p4, %p4936_p13 }
 0x471   : > { %p2876_p7 = pneg %p2875_p5 }
 0x473   : > { %3004 = dma.done.wait (%p2876_p7), %s2790_s9, 256  }
 0x474   : > { %3006 = vsyncadd (%p2876_p7), %s2790_s9, 4294967040  ;;  %p16_p8 = scmp.ge.s32.totalorder %s3086_s18, 4   ;;  %s4938_s12 = smov %s3013_s13 }
 0x475   : > { %s4939_s13 = smov %s3017_s14  ;;  %s4940_s14 = smov %s3098_s21 }
 0x476   : > { %s4941_s15 = smov %s3086_s18  ;;  %18 = sbr.rel (!%p16_p8) target bundleno = 5 (0x5), region = 77 }
 0x47b   :  { %2795 = vsyncpa [#allocation3], 1 }
 0x47c   :  { %2797 = vsyncpa [#allocation3 + $0x1], 1 }
 0x47d   :  { %2798 = vsyncpa [#allocation4], 1 }
 0x47e   :  { %2800 = vsyncpa [#allocation4 + $0x1], 1 }

</bundles_post_ra>
